<compile_context>
chip_gen: v7x
topology: tpu7x:2x2x1
jax: 0.10.0
libtpu: 0.0.40
codegen_flags: <defaults>
</compile_context>

<pallas_src>
import math

import jax
import jax.numpy as jnp
from jax.experimental import pallas as pl
from jax.experimental.pallas import tpu as pltpu

_K = 3  # kernel_size
_S = 3  # stride (defaults to kernel_size in nn.MaxPool2d)


def _pooled_size(dim: int, k: int, s: int) -> int:
    # PyTorch ceil_mode=True, padding=0:
    #   out = ceil((dim - k) / s) + 1, but the last window must start inside
    #   the (unpadded) input.
    out = math.ceil((dim - k) / s) + 1
    if (out - 1) * s >= dim:
        out -= 1
    return out


def _sentinel(dtype):
    # Value that can never win a max against real data (ceil_mode pad fill).
    if jnp.issubdtype(dtype, jnp.floating):
        return float("-inf")
    return int(jnp.iinfo(dtype).min)


def _choose_planes_per_block(nc: int, plane_bytes: int) -> int:
    """Largest divisor of nc whose input block stays ~<=2 MiB and keeps >=2 steps."""
    budget = 2 * 1024 * 1024
    cap = max(1, budget // max(plane_bytes, 1))
    if nc >= 2:
        cap = min(cap, max(1, nc // 2))  # keep >=2 grid steps (v7x: 2 TensorCores)
    best = 1
    for d in range(1, min(nc, cap) + 1):
        if nc % d == 0:
            best = d
    return best


def _make_kernel(bp, h, w, hp, wp, oh, ow, neg, dtype):
    padded = (hp > h) or (wp > w)

    def kernel(x_ref, o_ref, *scratch):
        # x_ref: (bp, h, w) input planes
        # o_ref: (1, bp, oh*ow) lane-dense flattened output slab
        if padded:
            pad_ref = scratch[0]  # (bp, hp, wp) VMEM scratch
            # Fused ceil_mode padding: valid region + sentinel strips.
            pad_ref[:, :h, :w] = x_ref[...]
            if hp > h:
                pad_ref[:, h:, :] = jnp.full((bp, hp - h, wp), neg, dtype)
            if wp > w:
                pad_ref[:, :h, w:] = jnp.full((bp, h, wp - w), neg, dtype)
            xp = pad_ref[...]
        else:
            xp = x_ref[...]
        # Stage 1: reduce pooling rows first (sublane axis; lane dim untouched).
        hred = jnp.max(xp.reshape(bp, oh, _K, wp), axis=2)      # (bp, oh, wp)
        # Stage 2: reduce pooling cols on the 3x-smaller intermediate.
        res = jnp.max(hred.reshape(bp, oh, ow, _K), axis=3)     # (bp, oh, ow)
        # Lane-dense store: flatten (oh, ow) -> oh*ow.
        o_ref[0] = res.reshape(bp, oh * ow)

    return kernel, padded


def maxpool2d_ceil(x: jax.Array) -> jax.Array:
    """MaxPool2d(kernel_size=3, stride=3, padding=0, ceil_mode=True) on NCHW."""
    n, c, h, w = x.shape
    oh = _pooled_size(h, _K, _S)
    ow = _pooled_size(w, _K, _S)
    hp = (oh - 1) * _S + _K
    wp = (ow - 1) * _S + _K

    dtype = x.dtype
    nc = n * c
    bp = _choose_planes_per_block(nc, h * w * dtype.itemsize)
    g = nc // bp
    neg = _sentinel(dtype)

    xf = x.reshape(nc, h, w)  # free reshape, no extra HBM pass
    kernel, padded = _make_kernel(bp, h, w, hp, wp, oh, ow, neg, dtype)
    scratch_shapes = [pltpu.VMEM((bp, hp, wp), dtype)] if padded else []

    # TODO(synk): for very large planes (block >> VMEM budget) also tile H.
    out = pl.pallas_call(
        kernel,
        out_shape=jax.ShapeDtypeStruct((g, bp, oh * ow), dtype),
        grid_spec=pltpu.PrefetchScalarGridSpec(
            num_scalar_prefetch=0,
            grid=(g,),
            in_specs=[pl.BlockSpec((bp, h, w), lambda i: (i, 0, 0))],
            out_specs=pl.BlockSpec((1, bp, oh * ow), lambda i: (i, 0, 0)),
            scratch_shapes=scratch_shapes,
        ),
        compiler_params=pltpu.CompilerParams(
            dimension_semantics=("parallel",)),
    )(xf)

    return out.reshape(n, c, oh, ow)


class Model:
    """JAX mirror of the PyTorch Model (only maxpool1 is used in forward)."""

    def __init__(self, key):
        # Deterministic init of unused-but-declared conv1 params (shapes only).
        k_w, k_b = jax.random.split(key)
        fan_in = 3 * 3 * 3
        bound = 1.0 / math.sqrt(fan_in)
        self.conv1_weight = jax.random.uniform(
            k_w, (6, 3, 3, 3), jnp.float32, -bound, bound
        )
        self.conv1_bias = jax.random.uniform(
            k_b, (6,), jnp.float32, -bound, bound
        )

    def __call__(self, x):
        return maxpool2d_ceil(x)


if __name__ == "__main__":
    key = jax.random.PRNGKey(0)
    k_param, k_in = jax.random.split(key)

    model = Model(k_param)

    # Small NCHW input consistent with conv1's in_channels=3.
    x = jax.random.normal(k_in, (2, 3, 16, 16), dtype=jnp.float32)

    y = model(x)
    y = jax.block_until_ready(y)

    # Sanity: PyTorch MaxPool2d(3, ceil_mode=True) on 16x16 -> 6x6.
    assert y.shape == (2, 3, 6, 6), y.shape

    # Cross-check against a pure-JAX reference (reduce_window w/ -inf pad).
    oh = _pooled_size(16, _K, _S)
    ow = _pooled_size(16, _K, _S)
    hp = (oh - 1) * _S + _K
    wp = (ow - 1) * _S + _K
    ref = jax.lax.reduce_window(
        jnp.pad(x, ((0, 0), (0, 0), (0, hp - 16), (0, wp - 16)),
                constant_values=-jnp.inf),
        -jnp.inf, jax.lax.max,
        window_dimensions=(1, 1, _K, _K),
        window_strides=(1, 1, _S, _S),
        padding="VALID",
    )
    assert jnp.allclose(y, ref), "mismatch vs reference"

    print("KERNEL_OK")
</pallas_src>

<mosaic_0001>
module attributes {stable_mosaic.version = 11 : i64} {
  func.func @kernel(%arg0: i32, %arg1: memref<3x16x16xf32, #tpu.memory_space<vmem>>, %arg2: memref<1x3x36xf32, #tpu.memory_space<vmem>>, %arg3: memref<3x18x18xf32, #tpu.memory_space<vmem>>) attributes {dimension_semantics = [#tpu.dimension_semantics<parallel>], iteration_bounds = array<i64: 2>, scalar_prefetch = 0 : i64, scratch_operands = 1 : i64, tpu.core_type = #tpu.core_type<tc>, window_params = [{transform_indices = @transform_0, window_bounds = array<i64: 3, 16, 16>}, {transform_indices = @transform_1, window_bounds = array<i64: 1, 3, 36>}]} {
    %c0 = arith.constant 0 : index
    %c0_0 = arith.constant 0 : index
    %c0_1 = arith.constant 0 : index
    %0 = vector.load %arg1[%c0, %c0_0, %c0_1] : memref<3x16x16xf32, #tpu.memory_space<vmem>>, vector<3x16x16xf32>
    %c0_2 = arith.constant 0 : index
    %c0_3 = arith.constant 0 : index
    %c0_4 = arith.constant 0 : index
    %1 = vector.load %arg3[%c0_2, %c0_3, %c0_4] : memref<3x18x18xf32, #tpu.memory_space<vmem>>, vector<3x16x16xf32>
    tpu.vector_store %arg3[%c0_2, %c0_3, %c0_4], %0 {strides = array<i32>} : memref<3x18x18xf32, #tpu.memory_space<vmem>>, vector<3x16x16xf32>,
    %cst = arith.constant 0xFF800000 : f32
    %2 = vector.broadcast %cst : f32 to vector<3x2x18xf32>
    %c0_5 = arith.constant 0 : index
    %c16 = arith.constant 16 : index
    %c0_6 = arith.constant 0 : index
    %3 = vector.load %arg3[%c0_5, %c16, %c0_6] : memref<3x18x18xf32, #tpu.memory_space<vmem>>, vector<3x2x18xf32>
    tpu.vector_store %arg3[%c0_5, %c16, %c0_6], %2 {strides = array<i32>} : memref<3x18x18xf32, #tpu.memory_space<vmem>>, vector<3x2x18xf32>,
    %cst_7 = arith.constant 0xFF800000 : f32
    %4 = vector.broadcast %cst_7 : f32 to vector<3x16x2xf32>
    %c0_8 = arith.constant 0 : index
    %c0_9 = arith.constant 0 : index
    %c16_10 = arith.constant 16 : index
    %5 = vector.load %arg3[%c0_8, %c0_9, %c16_10] : memref<3x18x18xf32, #tpu.memory_space<vmem>>, vector<3x16x2xf32>
    tpu.vector_store %arg3[%c0_8, %c0_9, %c16_10], %4 {strides = array<i32>} : memref<3x18x18xf32, #tpu.memory_space<vmem>>, vector<3x16x2xf32>,
    %c0_11 = arith.constant 0 : index
    %c0_12 = arith.constant 0 : index
    %c0_13 = arith.constant 0 : index
    %6 = vector.load %arg3[%c0_11, %c0_12, %c0_13] : memref<3x18x18xf32, #tpu.memory_space<vmem>>, vector<3x18x18xf32>
    %7 = vector.shape_cast %6 : vector<3x18x18xf32> to vector<3x6x3x18xf32>
    %cst_14 = arith.constant dense<0xFF800000> : vector<3x6x18xf32>
    %8 = vector.multi_reduction <maximumf>, %7, %cst_14 [2] : vector<3x6x3x18xf32> to vector<3x6x18xf32>
    %9 = vector.shape_cast %8 : vector<3x6x18xf32> to vector<3x6x6x3xf32>
    %cst_15 = arith.constant dense<0xFF800000> : vector<3x6x6xf32>
    %10 = vector.multi_reduction <maximumf>, %9, %cst_15 [3] : vector<3x6x6x3xf32> to vector<3x6x6xf32>
    %11 = vector.shape_cast %10 : vector<3x6x6xf32> to vector<3x36xf32>
    %c0_16 = arith.constant 0 : index
    %c0_17 = arith.constant 0 : index
    %c0_18 = arith.constant 0 : index
    %12 = vector.load %arg2[%c0_16, %c0_17, %c0_18] : memref<1x3x36xf32, #tpu.memory_space<vmem>>, vector<1x3x36xf32>
    %13 = vector.shape_cast %12 : vector<1x3x36xf32> to vector<3x36xf32>
    %14 = vector.shape_cast %11 : vector<3x36xf32> to vector<1x3x36xf32>
    tpu.vector_store %arg2[%c0_16, %c0_17, %c0_18], %14 {strides = array<i32>} : memref<1x3x36xf32, #tpu.memory_space<vmem>>, vector<1x3x36xf32>,
    return
  }
  func.func @transform_0(%arg0: i32) -> (i32, i32, i32) {
    %c0_i32 = arith.constant 0 : i32
    %c0_i32_0 = arith.constant 0 : i32
    %c0_i32_1 = arith.constant 0 : i32
    return %arg0, %c0_i32, %c0_i32_0 : i32, i32, i32
  }
  func.func @transform_1(%arg0: i32) -> (i32, i32, i32) {
    %c0_i32 = arith.constant 0 : i32
    %c0_i32_0 = arith.constant 0 : i32
    %c0_i32_1 = arith.constant 0 : i32
    return %arg0, %c0_i32, %c0_i32_0 : i32, i32, i32
  }
}

</mosaic_0001>

<bundles_post_ra>
// kernel: tpu_custom_call.1
= control target key start
LH: loop header
LB: loop body
LE: loop exit
PB: predicated region body
PF: predicated region fallthrough
CT: control target
= control target key end

     0   :  { %6 = vsyncpa [#allocation4], 0  ;;  %s3292_s0 = inlined_call_operand.hbm [shape: f32[6,16,16], index: 0, kind: input, shape index: {}]   ;;  %s3293_s1 = inlined_call_operand.vmem [shape: f32[2,3,36], index: 1, kind: output, shape index: {}]  }
   0x1   :  { %8 = vsyncpa [#allocation4 + $0x1], 0  ;;  %s2291_s6 = smov 0   ;;  %s2293_s7 = smov 0  }
   0x2   :  { %s2295_s8 = smov 0   ;;  %s2297_s9 = smov 0  }
   0x3 LB: > { %s2310_s10 = sadd.s32 4294967295, %s2261_s9   ;;  %s2313_s11 = sadd.s32 1, %s2261_s9   ;;  %s2261_s9 = sphi %s2297_s9, %s3300_s9   ;;  %s2257_s8 = sphi %s2295_s8, %s3299_s8   ;;  %s2253_s7 = sphi %s2293_s7, %s3298_s7   ;;  %s2249_s6 = sphi %s2291_s6, %s3297_s6  }
   0x4   : > { %s18_s12 = ssub.s32 %s2261_s9, %s2313_s11  ;;  %s21_s13 = sadd.s32 1, %s2257_s8 }
   0x5   : > { %p19_p0 = scmp.eq.s32.totalorder %s18_s12, 0  ;;  %p28_p1 = scmp.ne.s32.totalorder %s2257_s8, %s2253_s7 }
   0x6   : > { %p29_p2 = scmp.eq.s32.totalorder %s2261_s9, 0  ;;  %p34_p3 = scmp.ne.s32.totalorder %s2253_s7, %s2249_s6 }
   0x7   : > { %s2323_s14 = scalar_select %p19_p0, %s2257_s8, %s21_s13  }
   0x8   : > { %p30_p4 = por %p29_p2, %p28_p1  ;;  %p35_p5 = scmp.eq.s32.totalorder %s2310_s10, 0 }
   0x9   : > { %p2147_p6 = scmp.lt.s32.totalorder %s2261_s9, 2  ;;  %s84_s16 = sand.u32 1, %s2257_s8  }
   0xa   : > { %p2327_p7 = por %p35_p5, %p34_p3  ;;  %s2139_s17 = smul.u32 48, %s84_s16 }
   0xb   : > { %s2138_s18 = smul.u32 768, %s2261_s9  ;;  %p2333_p8 = pnand %p2147_p6, %p30_p4 }
   0xc   : > { %s88_s23 = scalar_lea.vmem [#allocation3], %s2139_s17  ;;  %s2345_s25 = scalar_lea.sflag [#allocation4], %s84_s16 }
   0xd   : > { %s2340_s22 = scalar_lea.hbm %s3292_s0, %s2138_s18  ;;  %s96_s24 = sshll.u32 %s88_s23, 4  ;;  %s2342_s24 = int_to_ptr.vmem [resolvable:$true] %s96_s24 }
   0xe   : > { %s2197_s26 = scalar_lea.hbm %s2340_s22, 768  ;;  %p2199_p11 = pneg %p2333_p8 }
   0xf   : > { %p2198_p10 = scmp.ne.s32.totalorder %s2340_s22, %s2197_s26  ;;  %s2202_s29 = scalar_lea.hbm %s3292_s0, 1536 }
  0x10   : > { %p2203_p0 = scmp.lt.u32.totalorder %s2340_s22, %s3292_s0  ;;  %p2204_p1 = scmp.lt.u32.totalorder %s2202_s29, %s2197_s26 }
  0x11   : > { %p2200_p12 = pnand %p2199_p11, %p2198_p10  ;;  %p2206_p3 = scmp.lt.u32.totalorder %s2197_s26, %s2340_s22 }
  0x12   : > { %p2205_p2 = por %p2204_p1, %p2203_p0 }
  0x13   : > { %p2201_p13 = pneg %p2200_p12 }
  0x14   : > { %p2207_p4 = por %p2206_p3, %p2205_p2 }
  0x16   : > { %p2208_p5 = pnand %p2207_p4, %p2201_p13 }
  0x18   : > { %2211 = shalt.err (!%p2208_p5)
}
  0x19   : > { %s2212_s3 = scalar_lea.vmem %s2342_s24, 768  ;;  %s2263_s4 = smov [#allocation3]  }
  0x1a   : > { %p2213_p6 = scmp.ne.s32.totalorder %s2342_s24, %s2212_s3  ;;  %s2217_s5 = sshll.u32 %s2263_s4, 4  ;;  %s2218_s5 = int_to_ptr.vmem [resolvable:$false] %s2217_s5 }
  0x1b   : > { %s2219_s6 = scalar_lea.vmem %s2218_s5, 1536  ;;  %p2220_p9 = scmp.lt.s32.totalorder %s2342_s24, %s2218_s5 }
  0x1c   : > { %p2215_p10 = pnand %p2213_p6, %p2199_p11  ;;  %p2221_p0 = scmp.lt.s32.totalorder %s2219_s6, %s2212_s3 }
  0x1e   : > { %p2216_p12 = pneg %p2215_p10  ;;  %p2222_p1 = por %p2221_p0, %p2220_p9 }
  0x20   : > { %p2223_p2 = pnand %p2222_p1, %p2216_p12 }
  0x22   : > { %2226 = shalt.err (!%p2223_p2)
}
  0x23   : > { %s2264_s12 = smov 128   ;;  %s2265_s13 = smov 8  }
  0x24   : > { %2146 = dma.hbm_to_vmem [thread:$0]  (!%p2333_p8), %s2340_s22, 768, %s2342_s24, %s2345_s25, %s2264_s12, %s2264_s12, %s2265_s13  }
  0x25   : > { %p104_p11 = scmp.lt.s32.totalorder %s2261_s9, 3  ;;  %p3296_p13 = scmp.ge.s32.totalorder %s2261_s9, 1 }
  0x27   : > { %p105_p3 = pnand %p3296_p13, %p104_p11 }
  0x28   : > { %s110_s16 = sand.u32 (!%p105_p3), 1, %s2253_s7  }
  0x29   : > { %108 = sbr.rel (%p105_p3) target bundleno = 713 (0x2c9), region = 24  ;;  %s111_s18 = scalar_lea.sflag (!%p105_p3), [#allocation4], %s110_s16 }
  0x2a   : > { %s2140_s17 = smul.u32 (!%p105_p3), 48, %s110_s16 }
  0x2c   : > { %s114_s20 = scalar_lea.vmem (!%p105_p3), [#allocation3], %s2140_s17 }
  0x30   : > { %2244 = dma.done.wait (%p2327_p7), %s111_s18, 768  }
  0x31   : > { %2246 = vsyncadd (%p2327_p7), %s111_s18, 4294966528  ;;  %vm150_vm0 = vcmask 140288   ;;  %v2266_v0 = vmov 1966171168   ;;  %v183_v2 = vlaneseq  ;;  %v2267_v3 = vmov -inf   ;;  %v138_v6 = vld [vmem:[%s114_s20 + $0x8] sm:$0xff] }
  0x32   : > { %v181_v1 = vunpack.c.l.s4 %v2266_v0  ;;  %151 = vst.msk [vmem:[#allocation2 + $0x10] sm:$0x3] %vm150_vm0, %v2267_v3  ;;  %152 = vst.msk [vmem:[#allocation2 + $0x28] sm:$0x3] %vm150_vm0, %v2267_v3  ;;  %vm143_vm1 = vcmask 130048   ;;  %vm154_vm2 = vcmask 146560  }
  0x33   : > { %153 = vst.msk [vmem:[#allocation2 + $0x40] sm:$0x3] %vm150_vm0, %v2267_v3  ;;  %v2382_v5 = vshrl.u32 %v183_v2, 7  ;;  %v137_v7 = vld [vmem:[%s114_s20] sm:$0xff]  ;;  %v140_v8 = vld [vmem:[%s114_s20 + $0x18] sm:$0xff]  ;;  %v139_v9 = vld [vmem:[%s114_s20 + $0x10] sm:$0xff] }
  0x34   : > { %v182_v4 = vunpack.c.0.s8 %v181_v1  ;;  %145 = vst.msk [vmem:[#allocation2 + $0x8] sm:$0xff] %vm143_vm1, %v138_v6  ;;  %144 = vst.msk [vmem:[#allocation2] sm:$0xff] %vm143_vm1, %v137_v7  ;;  %v141_v10 = vld [vmem:[%s114_s20 + $0x20] sm:$0xff]  ;;  %v142_v11 = vld [vmem:[%s114_s20 + $0x28] sm:$0xff]  ;;  %vm971_vm3 = vcmask 141312   ;;  %s2268_s9 = smov 125  }
  0x35   : > { %147 = vst.msk [vmem:[#allocation2 + $0x20] sm:$0xff] %vm143_vm1, %v140_v8  ;;  %146 = vst.msk [vmem:[#allocation2 + $0x18] sm:$0xff] %vm143_vm1, %v139_v9  ;;  %s2269_s15 = smov 122   ;;  %s2270_s19 = smov 119   ;;  %vm1297_vm4 = vcmask 1041409   ;;  %vm1300_vm5 = vcmask 1042434  }
  0x36   : > { %156 = vst.msk [vmem:[#allocation2 + $0x8] sm:$0xff] %vm154_vm2, %v2267_v3  ;;  %155 = vst.msk [vmem:[#allocation2] sm:$0xff] %vm154_vm2, %v2267_v3  ;;  %v2396_v13 = vsub.s32 %v182_v4, %v2382_v5  ;;  %s2271_s21 = smov 116   ;;  %s2272_s22 = smov 113   ;;  %vm1303_vm6 = vcmask 1043459   ;;  %vm1306_vm7 = vcmask 1044484  }
  0x37   : > { %158 = vst.msk [vmem:[#allocation2 + $0x20] sm:$0xff] %vm154_vm2, %v2267_v3  ;;  %157 = vst.msk [vmem:[#allocation2 + $0x18] sm:$0xff] %vm154_vm2, %v2267_v3  ;;  %vm1309_vm8 = vcmask 1045509   ;;  %vm1805_vm9 = vcmask 21504   ;;  %s2276_s23 = smov 12   ;;  %s2277_s24 = smov 6  }
  0x38   : > { %148 = vst.msk [vmem:[#allocation2 + $0x30] sm:$0xff] %vm143_vm1, %v141_v10  ;;  %149 = vst.msk [vmem:[#allocation2 + $0x38] sm:$0xff] %vm143_vm1, %v142_v11  ;;  %s2278_s25 = smov 30   ;;  %s2279_s26 = smov 18   ;;  %vm2041_vm10 = vcmask 48128   ;;  %vm2043_vm11 = vcmask 97280  }
  0x39   : > { %v2393_v12 = vld.sshfl [vmem:[#allocation2 + $0x10] sm:$0x11 pattern:$0x75316420]  ;;  %159 = vst.msk [vmem:[#allocation2 + $0x30] sm:$0xff] %vm154_vm2, %v2267_v3  ;;  %160 = vst.msk [vmem:[#allocation2 + $0x38] sm:$0xff] %vm154_vm2, %v2267_v3 }
  0x3a   : > { %v284_v14 = vcombine.high %v2393_v12, %v2393_v12  ;;  %v2406_v16 = vld.sshfl [vmem:[#allocation2 + $0x40] sm:$0x11 pattern:$0x75316420]  ;;  %v291_v20 = vrot.slane %v2393_v12, %v2396_v13  ;;  %s2280_s27 = smov 24   ;;  %p133_p7 = scmp.lt.s32.totalorder %s2310_s10, 1 }
  0x3b   : > { %v524_v22 = vcombine.high %v2406_v16, %v2406_v16  ;;  %vm2045_vm12 = vcmask 146432   ;;  %vm2047_vm13 = vcmask 195584   ;;  %vm2049_vm14 = vcmask 244736  }
  0x3c   : > { %v2404_v15 = vrot.slane %v284_v14, %v2396_v13  ;;  %s3302_s10 = smov (!%p133_p7, %s2310_s10), 1  ;;  %vm2051_vm15 = vcmask 288768  }
  0x3d   : > { %v2408_v17 = vld [vmem:[#allocation2 + $0x8] sm:$0xff]  ;;  %v2410_v18 = vld [vmem:[#allocation2] sm:$0xff]  ;;  %s2124_s28 = sshll.u32 %s3302_s10, 2 }
  0x3e   : > { %v2412_v19 = vld [vmem:[#allocation2 + $0x20] sm:$0xff]  ;;  %v668_v21 = vrot.slane %v2404_v15, %v2396_v13  ;;  %v235_v23 = vrot.slane %v2408_v17, %v2396_v13  ;;  %v186_v24 = vrot.slane %v2410_v18, %v2396_v13  ;;  %v2426_v26 = vld [vmem:[#allocation2 + $0x18] sm:$0xff]  ;;  %v179_v29 = vcombine.high %v2410_v18, %v2410_v18  ;;  %s136_s2 = scalar_lea.vmem %s3293_s1, %s2124_s28 }
  0x3f   : > { %v355_v25 = vrot.slane %v2412_v19, %v2396_v13  ;;  %v306_v30 = vrot.slane %v2426_v26, %v2396_v13  ;;  %v228_v33 = vcombine.high %v2408_v17, %v2408_v17 }
  0x40   : > { %v2428_v27 = vld [vmem:[#allocation2 + $0x30] sm:$0xff]  ;;  %v2430_v28 = vld [vmem:[#allocation2 + $0x38] sm:$0xff]  ;;  %v243_v34 = vcombine.high %v235_v23, %v235_v23  ;;  %v2443_v35 = vrot.slane %v235_v23, %v2396_v13  ;;  %v194_v36 = vcombine.high %v186_v24, %v186_v24  ;;  %v202_v37 = vrot.slane %v186_v24, %v2396_v13 }
  0x41   : > { %v426_v31 = vrot.slane %v2428_v27, %v2396_v13  ;;  %v475_v32 = vrot.slane %v2430_v28, %v2396_v13  ;;  %v363_v38 = vcombine.high %v355_v25, %v355_v25  ;;  %v2447_v39 = vrot.slane %v355_v25, %v2396_v13 }
  0x42   : > { %v314_v40 = vcombine.high %v306_v30, %v306_v30  ;;  %v322_v41 = vrot.slane %v306_v30, %v2396_v13  ;;  %v265_v42 = vrot.slane %v243_v34, %v2396_v13  ;;  %v273_v43 = vcombine.high %v2443_v35, %v2443_v35 }
  0x43   : > { %v2454_v44 = vrot.slane %v194_v36, %v2396_v13  ;;  %v224_v45 = vcombine.high %v202_v37, %v202_v37  ;;  %v385_v46 = vrot.slane %v363_v38, %v2396_v13  ;;  %v393_v47 = vcombine.high %v2447_v39, %v2447_v39 }
  0x44   : > { %v2460_v48 = vrot.slane %v314_v40, %v2396_v13  ;;  %v344_v49 = vcombine.high %v322_v41, %v322_v41  ;;  %v275_v50 = vcombine.high %v265_v42, %v265_v42  ;;  %v608_v51 = vcombine.low %v265_v42, %v273_v43 }
  0x45   : > { %v539_v52 = vcombine.low %v202_v37, %v2454_v44  ;;  %v553_v53 = vrot.slane %v224_v45, %v2396_v13  ;;  %v395_v54 = vcombine.high %v385_v46, %v385_v46  ;;  %v746_v55 = vcombine.low %v385_v46, %v393_v47 }
  0x46   : > { %v677_v56 = vcombine.low %v322_v41, %v2460_v48  ;;  %v691_v57 = vrot.slane %v344_v49, %v2396_v13  ;;  %v615_v58 = vrot.slane %v608_v51, %v2396_v13  ;;  %v622_v59 = vrot.slane %v275_v50, %v2396_v13 }
  0x47   : > { %v546_v60 = vrot.slane %v539_v52, %v2396_v13  ;;  %v434_v61 = vcombine.high %v426_v31, %v426_v31  ;;  %v753_v62 = vrot.slane %v746_v55, %v2396_v13  ;;  %v760_v63 = vrot.slane %v395_v54, %v2396_v13 }
  0x48   : > { %v684_v0 = vrot.slane %v677_v56, %v2396_v13  ;;  %v442_v1 = vrot.slane %v426_v31, %v2396_v13  ;;  %v623_v3 = vcombine.low %v615_v58, %v622_v59  ;;  %v483_v7 = vcombine.high %v475_v32, %v475_v32 }
  0x49   : > { %v554_v4 = vcombine.low %v546_v60, %v553_v53  ;;  %v2474_v6 = vrot.slane %v434_v61, %v2396_v13  ;;  %v761_v8 = vcombine.low %v753_v62, %v760_v63  ;;  %v2477_v11 = vrot.slane %v475_v32, %v2396_v13 }
  0x4a   : > { %v692_v9 = vcombine.low %v684_v0, %v691_v57  ;;  %v464_v10 = vcombine.high %v442_v1, %v442_v1  ;;  %v630_v14 = vrot.slane %v623_v3, %v2396_v13  ;;  %v505_v25 = vrot.slane %v483_v7, %v2396_v13 }
  0x4b   : > { %v561_v23 = vrot.slane %v554_v4, %v2396_v13  ;;  %v815_v24 = vcombine.low %v442_v1, %v2474_v6  ;;  %v768_v30 = vrot.slane %v761_v8, %v2396_v13  ;;  %v513_v36 = vcombine.high %v2477_v11, %v2477_v11 }
  0x4c   : > { %v699_v31 = vrot.slane %v692_v9, %v2396_v13  ;;  %v829_v34 = vrot.slane %v464_v10, %v2396_v13  ;;  %v993_v32 = vsel %vm971_vm3, %v630_v14, -inf  ;;  %v515_v40 = vcombine.high %v505_v25, %v505_v25 }
  0x4d   : > { %v972_v37 = vsel %vm971_vm3, %v561_v23, -inf  ;;  %v822_v38 = vrot.slane %v815_v24, %v2396_v13  ;;  %v994_v41 = vrot.slane %v993_v32, 4  ;;  %v1035_v43 = vsel %vm971_vm3, %v768_v30, -inf }
  0x4e   : > { %v973_v42 = vrot.slane %v972_v37, 4  ;;  %v1014_v45 = vsel %vm971_vm3, %v699_v31, -inf  ;;  %v1036_v46 = vrot.slane %v1035_v43, 4  ;;  %v884_v50 = vcombine.low %v505_v25, %v513_v36 }
  0x4f   : > { %v1015_v47 = vrot.slane %v1014_v45, 4  ;;  %v830_v49 = vcombine.low %v822_v38, %v829_v34  ;;  %v995_v51 = vmax.f32 %v993_v32, %v994_v41  ;;  %v898_v53 = vrot.slane %v515_v40, %v2396_v13 }
  0x50   : > { %v974_v52 = vmax.f32 %v972_v37, %v973_v42  ;;  %v193_v54 = vrot.slane %v179_v29, %v2396_v13  ;;  %v1037_v55 = vmax.f32 %v1035_v43, %v1036_v46  ;;  %v891_v58 = vrot.slane %v884_v50, %v2396_v13 }
  0x51   : > { %v1016_v56 = vmax.f32 %v1014_v45, %v1015_v47  ;;  %v837_v57 = vrot.slane %v830_v49, %v2396_v13  ;;  %v996_v59 = vrot.slane %v995_v51, 2  ;;  %v226_v14 = vcombine.high %v2454_v44, %v2454_v44 }
  0x52   : > { %v975_v60 = vrot.slane %v974_v52, 2  ;;  %v195_v61 = vcombine.high %v193_v54, %v193_v54  ;;  %v209_v62 = vrot.slane %v193_v54, %v2396_v13  ;;  %v1038_v63 = vrot.slane %v1037_v55, 2 }
  0x53   : > { %v1017_v0 = vrot.slane %v1016_v56, 2  ;;  %v1056_v1 = vsel %vm971_vm3, %v837_v57, -inf  ;;  %v899_v3 = vcombine.low %v891_v58, %v898_v53  ;;  %v997_v4 = vmax.f32 %v995_v51, %v996_v59 }
  0x54   : > { %v976_v7 = vmax.f32 %v974_v52, %v975_v60  ;;  %v1057_v18 = vrot.slane %v1056_v1, 4  ;;  %v223_v29 = vrot.slane %v195_v61, %v2396_v13  ;;  %v1039_v8 = vmax.f32 %v1037_v55, %v1038_v63 }
  0x55   : > { %v1018_v9 = vmax.f32 %v1016_v56, %v1017_v0  ;;  %v906_v10 = vrot.slane %v899_v3, %v2396_v13  ;;  %v998_v23 = vrot.slane %v997_v4, 1  ;;  %v562_v32 = vcombine.low %v226_v14, %v209_v62 }
  0x56   : > { %v977_v24 = vrot.slane %v976_v7, 1  ;;  %v1058_v25 = vmax.f32 %v1056_v1, %v1057_v18  ;;  %v576_v30 = vrot.slane %v223_v29, %v2396_v13  ;;  %v1040_v31 = vrot.slane %v1039_v8, 1 }
  0x57   : > { %v1019_v34 = vrot.slane %v1018_v9, 1  ;;  %v1077_v36 = vsel %vm971_vm3, %v906_v10, -inf  ;;  %v2508_v37 = vmax.f32 %v997_v4, %v998_v23  ;;  %v569_v44 = vrot.slane %v562_v32, %v2396_v13 }
  0x58   : > { %v2510_v38 = vmax.f32 %v976_v7, %v977_v24  ;;  %v1059_v40 = vrot.slane %v1058_v25, 2  ;;  %v1078_v41 = vrot.slane %v1077_v36, 4  ;;  %v2512_v42 = vmax.f32 %v1039_v8, %v1040_v31 }
  0x59   : > { %v2514_v43 = vmax.f32 %v1018_v9, %v1019_v34  ;;  %v2128_v45 = vcombine.high %v209_v62, %v223_v29  ;;  %1122 = vrot.lane.b32.xlu1 %v2508_v37, %s2268_s9  ;;  %v599_v49 = vrot.slane %v2443_v35, %v2396_v13  ;;  %v577_v50 = vcombine.low %v569_v44, %v576_v30 }
  0x5a   : > { %1116 = vrot.lane.b32.xlu0 %v2510_v38, %s2268_s9  ;;  %v1060_v46 = vmax.f32 %v1058_v25, %v1059_v40  ;;  %v1079_v47 = vmax.f32 %v1077_v36, %v1078_v41  ;;  %v242_v52 = vrot.slane %v228_v33, %v2396_v13  ;;  %v299_v53 = vcombine.high %v2426_v26, %v2426_v26 }
  0x5b   : > { %v592_v51 = vrot.slane %v2128_v45, %v2396_v13  ;;  %v346_v56 = vcombine.high %v2460_v48, %v2460_v48  ;;  %v737_v57 = vrot.slane %v2447_v39, %v2396_v13  ;;  %v584_v35 = vrot.slane %v577_v50, %v2396_v13 }
  0x5c   : > { %v1061_v54 = vrot.slane %v1060_v46, 1  ;;  %v1080_v55 = vrot.slane %v1079_v47, 2  ;;  %v244_v59 = vcombine.high %v242_v52, %v242_v52  ;;  %v258_v60 = vrot.slane %v242_v52, %v2396_v13 }
  0x5d   : > { %v600_v58 = vcombine.low %v592_v51, %v599_v49  ;;  %1134 = vrot.lane.b32.xlu1 %v2512_v42, %s2268_s9  ;;  %v313_v33 = vrot.slane %v299_v53, %v2396_v13  ;;  %v979_v48 = vsel %vm971_vm3, %v584_v35, -inf  ;;  %v419_v29 = vcombine.high %v2428_v27, %v2428_v27 }
  0x5e   : > { %1128 = vrot.lane.b32.xlu0 %v2514_v43, %s2268_s9  ;;  %v2540_v17 = vmax.f32 %v1060_v46, %v1061_v54  ;;  %v1081_v26 = vmax.f32 %v1079_v47, %v1080_v55  ;;  %v2546_v61 = vrot.slane %v244_v59, %v2396_v13  ;;  %v274_v62 = vcombine.high %v258_v60, %v258_v60 }
  0x5f   : > { %v607_v39 = vrot.slane %v600_v58, %v2396_v13  ;;  %v980_v0 = vrot.slane %v979_v48, 4  ;;  %v315_v1 = vcombine.high %v313_v33, %v313_v33  ;;  %v329_v3 = vrot.slane %v313_v33, %v2396_v13 }
  0x60   : > { %v1082_v63 = vrot.slane %v1081_v26, 1  ;;  %v631_v7 = vcombine.low %v258_v60, %v2546_v61  ;;  %v645_v18 = vrot.slane %v274_v62, %v2396_v13  ;;  %v433_v25 = vrot.slane %v419_v29, %v2396_v13 }
  0x61   : > { %v986_v4 = vsel %vm971_vm3, %v607_v39, -inf  ;;  %1140 = vrot.lane.b32.xlu1 %v2540_v17, %s2268_s9  ;;  %v981_v9 = vmax.f32 %v979_v48, %v980_v0  ;;  %v343_v14 = vrot.slane %v315_v1, %v2396_v13  ;;  %v700_v24 = vcombine.low %v346_v56, %v329_v3 }
  0x62   : > { %v2556_v8 = vmax.f32 %v1081_v26, %v1082_v63  ;;  %v987_v10 = vrot.slane %v986_v4, 4  ;;  %v638_v23 = vrot.slane %v631_v7, %v2396_v13  ;;  %v466_v30 = vcombine.high %v2474_v6, %v2474_v6 }
  0x63   : > { %v982_v27 = vrot.slane %v981_v9, 2  ;;  %v714_v34 = vrot.slane %v343_v14, %v2396_v13  ;;  %v2129_v36 = vcombine.high %v329_v3, %v343_v14  ;;  %v707_v40 = vrot.slane %v700_v24, %v2396_v13 }
  0x64   : > { %1146 = vrot.lane.b32.xlu0 %v2556_v8, %s2268_s9  ;;  %v988_v31 = vmax.f32 %v986_v4, %v987_v10  ;;  %v646_v32 = vcombine.low %v638_v23, %v645_v18  ;;  %v435_v41 = vcombine.high %v433_v25, %v433_v25  ;;  %v449_v44 = vrot.slane %v433_v25, %v2396_v13 }
  0x65   : > { %1152 = vrot.lane.b32.xlu1 %v2510_v38, %s2269_s15  ;;  %v983_v45 = vmax.f32 %v981_v9, %v982_v27  ;;  %v730_v46 = vrot.slane %v2129_v36, %v2396_v13  ;;  %v348_v47 = vcombine.high %v2412_v19, %v2412_v19  ;;  %v715_v50 = vcombine.low %v707_v40, %v714_v34 }
  0x66   : > { %v989_v6 = vrot.slane %v988_v31, 2  ;;  %v653_v49 = vrot.slane %v646_v32, %v2396_v13  ;;  %v463_v51 = vrot.slane %v435_v41, %v2396_v13  ;;  %v838_v52 = vcombine.low %v466_v30, %v449_v44 }
  0x67   : > { %v984_v53 = vrot.slane %v983_v45, 1  ;;  %v738_v55 = vcombine.low %v730_v46, %v737_v57  ;;  %v362_v56 = vrot.slane %v348_v47, %v2396_v13  ;;  %v722_v58 = vrot.slane %v715_v50, %v2396_v13 }
  0x68   : > { %v990_v54 = vmax.f32 %v988_v31, %v989_v6  ;;  %v1000_v35 = vsel %vm971_vm3, %v653_v49, -inf  ;;  %v845_v59 = vrot.slane %v838_v52, %v2396_v13  ;;  %v852_v60 = vrot.slane %v463_v51, %v2396_v13 }
  0x69   : > { %v2580_v19 = vmax.f32 %v983_v45, %v984_v53  ;;  %v1001_v33 = vrot.slane %v1000_v35, 4  ;;  %v745_v48 = vrot.slane %v738_v55, %v2396_v13  ;;  %v1021_v39 = vsel %vm971_vm3, %v722_v58, -inf }
  0x6a   : > { %v991_v26 = vrot.slane %v990_v54, 1  ;;  %v853_v62 = vcombine.low %v845_v59, %v852_v60  ;;  %v364_v57 = vcombine.high %v362_v56, %v362_v56  ;;  %v378_v63 = vrot.slane %v362_v56, %v2396_v13 }
  0x6b   : > { %1118 = vrot.lane.b32.xlu0 %v2580_v19, %s2268_s9  ;;  %v1002_v1 = vmax.f32 %v1000_v35, %v1001_v33  ;;  %v1022_v3 = vrot.slane %v1021_v39, 4  ;;  %v1028_v4 = vsel %vm971_vm3, %v745_v48, -inf  ;;  %v2130_v23 = vcombine.high %v449_v44, %v463_v51 }
  0x6c   : > { %v2587_v0 = vmax.f32 %v990_v54, %v991_v26  ;;  %v1029_v7 = vrot.slane %v1028_v4, 4  ;;  %v860_v18 = vrot.slane %v853_v62, %v2396_v13  ;;  %v2592_v29 = vrot.slane %v364_v57, %v2396_v13 }
  0x6d   : > { %v394_v9 = vcombine.high %v378_v63, %v378_v63  ;;  %v1003_v10 = vrot.slane %v1002_v1, 2  ;;  %v1023_v14 = vmax.f32 %v1021_v39, %v1022_v3  ;;  %v875_v24 = vrot.slane %v2477_v11, %v2396_v13 }
  0x6e   : > { %1120 = vrot.lane.b32.xlu1 %v2587_v0, %s2268_s9  ;;  %v1030_v25 = vmax.f32 %v1028_v4, %v1029_v7  ;;  %v1063_v30 = vsel %vm971_vm3, %v860_v18, -inf  ;;  %v769_v27 = vcombine.low %v378_v63, %v2592_v29  ;;  %v868_v40 = vrot.slane %v2130_v23, %v2396_v13 }
  0x6f   : > { %v783_v31 = vrot.slane %v394_v9, %v2396_v13  ;;  %v1004_v34 = vmax.f32 %v1002_v1, %v1003_v10  ;;  %v1024_v36 = vrot.slane %v1023_v14, 2  ;;  %v1064_v32 = vrot.slane %v1063_v30, 4 }
  0x70   : > { %v1031_v41 = vrot.slane %v1030_v25, 2  ;;  %v776_v45 = vrot.slane %v769_v27, %v2396_v13  ;;  %v276_v44 = vcombine.high %v2546_v61, %v2546_v61  ;;  %v468_v11 = vcombine.high %v2430_v28, %v2430_v28 }
  0x71   : > { %v1005_v6 = vrot.slane %v1004_v34, 1  ;;  %v1025_v46 = vmax.f32 %v1023_v14, %v1024_v36  ;;  %v1065_v47 = vmax.f32 %v1063_v30, %v1064_v32  ;;  %v876_v49 = vcombine.low %v868_v40, %v875_v24  ;;  %v2126_v14 = vld.sshfl [vmem:[#allocation2 + $0x28] sm:$0x11 pattern:$0x75316420] }
  0x72   : > { %v1032_v50 = vmax.f32 %v1030_v25, %v1031_v41  ;;  %v784_v51 = vcombine.low %v776_v45, %v783_v31  ;;  %v654_v52 = vcombine.low %v276_v44, %v291_v20  ;;  %v482_v53 = vrot.slane %v468_v11, %v2396_v13 }
  0x73   : > { %v2611_v54 = vmax.f32 %v1004_v34, %v1005_v6  ;;  %v1026_v55 = vrot.slane %v1025_v46, 1  ;;  %v1066_v56 = vrot.slane %v1065_v47, 2  ;;  %v883_v61 = vrot.slane %v876_v49, %v2396_v13 }
  0x74   : > { %v1033_v35 = vrot.slane %v1032_v50, 1  ;;  %v791_v28 = vrot.slane %v784_v51, %v2396_v13  ;;  %v661_v58 = vrot.slane %v654_v52, %v2396_v13  ;;  %v484_v59 = vcombine.high %v482_v53, %v482_v53 }
  0x75   : > { %1124 = vrot.lane.b32.xlu0 %v2611_v54, %s2268_s9  ;;  %v2618_v60 = vmax.f32 %v1025_v46, %v1026_v55  ;;  %v1067_v12 = vmax.f32 %v1065_v47, %v1066_v56  ;;  %v1070_v20 = vsel %vm971_vm3, %v883_v61, -inf  ;;  %v498_v26 = vrot.slane %v482_v53, %v2396_v13 }
  0x76   : > { %v2622_v33 = vmax.f32 %v1032_v50, %v1033_v35  ;;  %v1042_v48 = vsel %vm971_vm3, %v791_v28, -inf  ;;  %v1071_v39 = vrot.slane %v1070_v20, 4  ;;  %v669_v62 = vcombine.low %v661_v58, %v668_v21 }
  0x77   : > { %1130 = vrot.lane.b32.xlu1 %v2618_v60, %s2268_s9  ;;  %v1068_v57 = vrot.slane %v1067_v12, 1  ;;  %v1043_v63 = vrot.slane %v1042_v48, 4  ;;  %v512_v1 = vrot.slane %v484_v59, %v2396_v13  ;;  %v514_v3 = vcombine.high %v498_v26, %v498_v26 }
  0x78   : > { %v676_v4 = vrot.slane %v669_v62, %v2396_v13  ;;  %v531_v7 = vrot.slane %v2406_v16, %v2396_v13  ;;  %v538_v18 = vrot.slane %v524_v22, %v2396_v13  ;;  %v1072_v23 = vmax.f32 %v1070_v20, %v1071_v39 }
  0x79   : > { %1132 = vrot.lane.b32.xlu0 %v2622_v33, %s2268_s9  ;;  %v2640_v15 = vmax.f32 %v1067_v12, %v1068_v57  ;;  %v1044_v21 = vmax.f32 %v1042_v48, %v1043_v63  ;;  %v907_v9 = vcombine.low %v498_v26, %v512_v1  ;;  %v921_v10 = vrot.slane %v514_v3, %v2396_v13 }
  0x7a   : > { %v1007_v24 = vsel %vm971_vm3, %v676_v4, -inf  ;;  %v516_v25 = vcombine.high %v512_v1, %v512_v1  ;;  %v944_v31 = vrot.slane %v538_v18, %v2396_v13  ;;  %v396_v34 = vcombine.high %v2592_v29, %v2592_v29 }
  0x7b   : > { %1142 = vrot.lane.b32.xlu1 %v2640_v15, %s2268_s9  ;;  %v1045_v30 = vrot.slane %v1044_v21, 2  ;;  %v1008_v16 = vrot.slane %v1007_v24, 4  ;;  %v914_v22 = vrot.slane %v907_v9, %v2396_v13  ;;  %v404_v36 = vcombine.high %v2126_v14, %v2126_v14 }
  0x7c   : > { %v930_v27 = vcombine.low %v516_v25, %v531_v7  ;;  %v411_v41 = vrot.slane %v2126_v14, %v2396_v13  ;;  %v1073_v45 = vrot.slane %v1072_v23, 2 }
  0x7d   : > { %v1046_v32 = vmax.f32 %v1044_v21, %v1045_v30  ;;  %v922_v40 = vcombine.low %v914_v22, %v921_v10  ;;  %v418_v11 = vrot.slane %v404_v36, %v2396_v13  ;;  %v1009_v46 = vmax.f32 %v1007_v24, %v1008_v16 }
  0x7e   : > { %v937_v44 = vrot.slane %v930_v27, %v2396_v13  ;;  %v792_v49 = vcombine.low %v396_v34, %v411_v41  ;;  %v1074_v56 = vmax.f32 %v1072_v23, %v1073_v45 }
  0x7f   : > { %v1047_v6 = vrot.slane %v1046_v32, 1  ;;  %1178 = vrot.lane.b32.xlu1 %v2640_v15, %s2269_s15  ;;  %v929_v47 = vrot.slane %v922_v40, %v2396_v13  ;;  %v806_v29 = vrot.slane %v418_v11, %v2396_v13  ;;  %v1010_v61 = vrot.slane %v1009_v46, 2 }
  0x80   : > { %v945_v50 = vcombine.low %v937_v44, %v944_v31  ;;  %v799_v53 = vrot.slane %v792_v49, %v2396_v13  ;;  %v1075_v59 = vrot.slane %v1074_v56, 1 }
  0x81   : > { %v2657_v51 = vmax.f32 %v1046_v32, %v1047_v6  ;;  %v1084_v52 = vsel %vm971_vm3, %v929_v47, -inf  ;;  %v1011_v12 = vmax.f32 %v1009_v46, %v1010_v61 }
  0x82   : > { %v952_v55 = vrot.slane %v945_v50, %v2396_v13  ;;  %v807_v35 = vcombine.low %v799_v53, %v806_v29  ;;  %v2677_v26 = vmax.f32 %v1074_v56, %v1075_v59  ;;  %v1085_v39 = vrot.slane %v1084_v52, 4 }
  0x83   : > { %1136 = vrot.lane.b32.xlu0 %v2657_v51, %s2268_s9  ;;  %1214 = vrot.lane.b32.xlu1 %v2640_v15, %s2270_s19 }
  0x84   : > { %v1091_v28 = vsel %vm971_vm3, %v952_v55, -inf  ;;  %v814_v58 = vrot.slane %v807_v35, %v2396_v13  ;;  %v1012_v13 = vrot.slane %v1011_v12, 1  ;;  %v1086_v62 = vmax.f32 %v1084_v52, %v1085_v39 }
  0x85   : > { %v1092_v4 = vrot.slane %v1091_v28, 4 }
  0x86   : > { %v2673_v20 = vsel %vm971_vm3, %v814_v58, -inf  ;;  %v2685_v48 = vmax.f32 %v1011_v12, %v1012_v13  ;;  %v1087_v57 = vrot.slane %v1086_v62, 2 }
  0x87   : > { %1154 = vrot.lane.b32.xlu0 %v2580_v19, %s2269_s15  ;;  %1156 = vrot.lane.b32.xlu1 %v2587_v0, %s2269_s15  ;;  %v1093_v7 = vmax.f32 %v1091_v28, %v1092_v4  ;;  %v1050_v27 = vrot.slane %v2673_v20, 4 }
  0x88   : > { %v1088_v63 = vmax.f32 %v1086_v62, %v1087_v57 }
  0x89   : > { %v1094_v18 = vrot.slane %v1093_v7, 2  ;;  %v1051_v36 = vmax.f32 %v2673_v20, %v1050_v27 }
  0x8a   : > { %v1089_v1 = vrot.slane %v1088_v63, 1 }
  0x8b   : > { %1190 = vrot.lane.b32.xlu0 %v2580_v19, %s2270_s19  ;;  %1192 = vrot.lane.b32.xlu1 %v2587_v0, %s2270_s19  ;;  %v1095_v21 = vmax.f32 %v1093_v7, %v1094_v18  ;;  %v1052_v32 = vrot.slane %v1051_v36, 2 }
  0x8c   : > { %v2711_v3 = vmax.f32 %v1088_v63, %v1089_v1 }
  0x8d   : > { %v1096_v9 = vrot.slane %v1095_v21, 1  ;;  %v1053_v45 = vmax.f32 %v1051_v36, %v1052_v32 }
  0x8f   : > { %1144 = vrot.lane.b32.xlu0 %v2677_v26, %s2268_s9  ;;  %1166 = vrot.lane.b32.xlu1 %v2618_v60, %s2269_s15  ;;  %v2743_v10 = vmax.f32 %v1095_v21, %v1096_v9  ;;  %v1054_v6 = vrot.slane %v1053_v45, 1 }
  0x91   : > { %v2817_v47 = vmax.f32 %v1053_v45, %v1054_v6 }
  0x93   : > { %1180 = vrot.lane.b32.xlu0 %v2677_v26, %s2269_s15  ;;  %1126 = vrot.lane.b32.xlu1 %v2685_v48, %s2268_s9 }
  0x97   : > { %1216 = vrot.lane.b32.xlu0 %v2677_v26, %s2270_s19  ;;  %1182 = vrot.lane.b32.xlu1 %v2556_v8, %s2269_s15 }
  0x9b   : > { %1158 = vrot.lane.b32.xlu0 %v2508_v37, %s2269_s15  ;;  %1194 = vrot.lane.b32.xlu1 %v2508_v37, %s2270_s19 }
  0x9f   : > { %1176 = vrot.lane.b32.xlu0 %v2540_v17, %s2269_s15  ;;  %1212 = vrot.lane.b32.xlu1 %v2540_v17, %s2270_s19 }
  0xa3   : > { %1188 = vrot.lane.b32.xlu0 %v2510_v38, %s2270_s19  ;;  %1226 = vrot.lane.b32.xlu1 %v2580_v19, %s2271_s21 }
  0xa7   : > { %1202 = vrot.lane.b32.xlu0 %v2618_v60, %s2270_s19  ;;  %1262 = vrot.lane.b32.xlu1 %v2580_v19, %s2272_s22 }
  0xab   : > { %1218 = vrot.lane.b32.xlu0 %v2556_v8, %s2270_s19  ;;  %1148 = vrot.lane.b32.xlu1 %v2711_v3, %s2268_s9 }
  0xaf   : > { %1250 = vrot.lane.b32.xlu0 %v2640_v15, %s2271_s21  ;;  %1168 = vrot.lane.b32.xlu1 %v2622_v33, %s2269_s15 }
  0xb3   : > { %1286 = vrot.lane.b32.xlu0 %v2640_v15, %s2272_s22  ;;  %1196 = vrot.lane.b32.xlu1 %v2611_v54, %s2270_s19 }
  0xb7   : > { %1160 = vrot.lane.b32.xlu0 %v2611_v54, %s2269_s15  ;;  %1220 = vrot.lane.b32.xlu1 %v2711_v3, %s2270_s19 }
  0xbb   : > { %1184 = vrot.lane.b32.xlu0 %v2711_v3, %s2269_s15  ;;  %1252 = vrot.lane.b32.xlu1 %v2677_v26, %s2271_s21 }
  0xbf   : > { %1204 = vrot.lane.b32.xlu0 %v2622_v33, %s2270_s19  ;;  %1288 = vrot.lane.b32.xlu1 %v2677_v26, %s2272_s22 }
  0xc3   : > { %1228 = vrot.lane.b32.xlu0 %v2587_v0, %s2271_s21  ;;  %1162 = vrot.lane.b32.xlu1 %v2685_v48, %s2269_s15 }
  0xc7   : > { %1264 = vrot.lane.b32.xlu0 %v2587_v0, %s2272_s22  ;;  %1170 = vrot.lane.b32.xlu1 %v2512_v42, %s2269_s15 }
  0xcb   : > { %1150 = vrot.lane.b32.xlu0 %v2743_v10, %s2268_s9  ;;  %1198 = vrot.lane.b32.xlu1 %v2685_v48, %s2270_s19  ;;  %v2751_v14 = vpop.permute.xlu1 %1122 }
  0xcc   : > { %v2757_v23 = vpop.permute.xlu0 %1116 }
  0xcf   : > { %1164 = vrot.lane.b32.xlu0 %v2514_v43, %s2269_s15  ;;  %1206 = vrot.lane.b32.xlu1 %v2512_v42, %s2270_s19  ;;  %v2759_v24 = vpop.permute.xlu1 %1134 }
  0xd0   : > { %v2769_v25 = vpop.permute.xlu0 %1128 }
  0xd3   : > { %1186 = vrot.lane.b32.xlu0 %v2743_v10, %s2269_s15  ;;  %1224 = vrot.lane.b32.xlu1 %v2510_v38, %s2271_s21  ;;  %v2771_v30 = vpop.permute.xlu1 %1140 }
  0xd6   : > { %v2777_v16 = vpop.permute.xlu0 %1146 }
  0xd7   : > { %1200 = vrot.lane.b32.xlu0 %v2514_v43, %s2270_s19  ;;  %1238 = vrot.lane.b32.xlu1 %v2618_v60, %s2271_s21  ;;  %v1153_v22 = vpop.permute.xlu1 %1152 }
  0xdb   : > { %1222 = vrot.lane.b32.xlu0 %v2743_v10, %s2270_s19  ;;  %1254 = vrot.lane.b32.xlu1 %v2556_v8, %s2271_s21 }
  0xdd   : > { %v2786_v31 = vpop.permute.xlu0 %1118 }
  0xdf   : > { %1230 = vrot.lane.b32.xlu0 %v2508_v37, %s2271_s21  ;;  %1266 = vrot.lane.b32.xlu1 %v2508_v37, %s2272_s22 }
  0xe0   : > { %v2790_v34 = vpop.permute.xlu1 %1120 }
  0xe3   : > { %1248 = vrot.lane.b32.xlu0 %v2540_v17, %s2271_s21  ;;  %1284 = vrot.lane.b32.xlu1 %v2540_v17, %s2272_s22 }
  0xe7   : > { %1260 = vrot.lane.b32.xlu0 %v2510_v38, %s2272_s22  ;;  %1172 = vrot.lane.b32.xlu1 %v2657_v51, %s2269_s15  ;;  %v2797_v40 = vpop.permute.xlu0 %1124 }
  0xe9   : > { %v2799_v41 = vpop.permute.xlu1 %1130 }
  0xeb   : > { %1274 = vrot.lane.b32.xlu0 %v2618_v60, %s2272_s22  ;;  %1232 = vrot.lane.b32.xlu1 %v2611_v54, %s2271_s21  ;;  %v2809_v11 = vpop.permute.xlu0 %1132 }
  0xed   : > { %v2805_v44 = vpop.permute.xlu1 %1142 }
  0xef   : > { %1290 = vrot.lane.b32.xlu0 %v2556_v8, %s2272_s22  ;;  %1256 = vrot.lane.b32.xlu1 %v2711_v3, %s2271_s21 }
  0xf1   : > { %v1179_v46 = vpop.permute.xlu1 %1178 }
  0xf2   : > { %v1441_v1 = vrot.slane %v1179_v46, 7 }
  0xf3   : > { %1208 = vrot.lane.b32.xlu0 %v2657_v51, %s2270_s19  ;;  %1276 = vrot.lane.b32.xlu1 %v2622_v33, %s2272_s22 }
  0xf5   : > { %v2819_v49 = vpop.permute.xlu0 %1136  ;;  %v1215_v50 = vpop.permute.xlu1 %1214 }
  0xf6   : > { %v1451_v4 = vrot.slane %v1215_v50, 7 }
  0xf7   : > { %1240 = vrot.lane.b32.xlu0 %v2622_v33, %s2271_s21  ;;  %1138 = vrot.lane.b32.xlu1 %v2817_v47, %s2268_s9 }
  0xf9   : > { %v1155_v29 = vpop.permute.xlu0 %1154  ;;  %v1157_v52 = vpop.permute.xlu1 %1156 }
  0xfa   : > { %v1321_v12 = vrot.slane %v1155_v29, 7  ;;  %v1323_v20 = vrot.slane %v1157_v52, 6 }
  0xfb   : > { %1268 = vrot.lane.b32.xlu0 %v2611_v54, %s2272_s22  ;;  %1210 = vrot.lane.b32.xlu1 %v2817_v47, %s2270_s19 }
  0xfc   : > { %v1322_v62 = vsel %vm1297_vm4, %v1321_v12, %v1153_v22  ;;  %v1431_v12 = vrot.slane %v2805_v44, 7 }
  0xfd   : > { %v1191_v53 = vpop.permute.xlu0 %1190  ;;  %v1193_v55 = vpop.permute.xlu1 %1192  ;;  %v1324_v63 = vsel %vm1300_vm5, %v1323_v20, %v1322_v62 }
  0xfe   : > { %v1331_v46 = vrot.slane %v1191_v53, 7  ;;  %v1333_v52 = vrot.slane %v1193_v55, 6  ;;  %v1432_v55 = vsel %vm1297_vm4, %v1431_v12, %v2771_v30 }
  0xff   : > { %1292 = vrot.lane.b32.xlu0 %v2711_v3, %s2272_s22  ;;  %1236 = vrot.lane.b32.xlu1 %v2514_v43, %s2271_s21 }
 0x101   : > { %v1145_v56 = vpop.permute.xlu0 %1144  ;;  %v2833_v61 = vpop.permute.xlu1 %1166 }
 0x103   : > { %1174 = vrot.lane.b32.xlu0 %v2817_v47, %s2269_s15  ;;  %1258 = vrot.lane.b32.xlu1 %v2743_v10, %s2271_s21 }
 0x105   : > { %v1181_v35 = vpop.permute.xlu0 %1180  ;;  %v2839_v28 = vpop.permute.xlu1 %1126 }
 0x106   : > { %v1443_v21 = vrot.slane %v1181_v35, 6 }
 0x107   : > { %1234 = vrot.lane.b32.xlu0 %v2685_v48, %s2271_s21  ;;  %1272 = vrot.lane.b32.xlu1 %v2514_v43, %s2272_s22 }
 0x109   : > { %v1217_v58 = vpop.permute.xlu0 %1216  ;;  %v1183_v59 = vpop.permute.xlu1 %1182 }
 0x10a   : > { %v1445_v18 = vrot.slane %v1183_v59, 5  ;;  %v1453_v9 = vrot.slane %v1217_v58, 6 }
 0x10b   : > { %1242 = vrot.lane.b32.xlu0 %v2512_v42, %s2271_s21  ;;  %1294 = vrot.lane.b32.xlu1 %v2743_v10, %s2272_s22 }
 0x10d   : > { %v1159_v13 = vpop.permute.xlu0 %1158  ;;  %v1195_v39 = vpop.permute.xlu1 %1194 }
 0x10e   : > { %v1325_v57 = vrot.slane %v1159_v13, 5  ;;  %v1335_v29 = vrot.slane %v1195_v39, 5  ;;  %v1433_v13 = vrot.slane %v1145_v56, 6  ;;  %v1435_v39 = vrot.slane %v2777_v16, 5 }
 0x10f   : > { %1270 = vrot.lane.b32.xlu0 %v2685_v48, %s2272_s22  ;;  %1280 = vrot.lane.b32.xlu1 %v2657_v51, %s2272_s22 }
 0x110   : > { %v1326_v7 = vsel %vm1303_vm6, %v1325_v57, %v1324_v63  ;;  %v1434_v44 = vsel %vm1300_vm5, %v1433_v13, %v1432_v55  ;;  %v1299_v55 = vrot.slane %v2587_v0, 6  ;;  %v1313_v0 = vrot.slane %v2790_v34, 6 }
 0x111   : > { %v1177_v27 = vpop.permute.xlu0 %1176  ;;  %v1213_v36 = vpop.permute.xlu1 %1212 }
 0x112   : > { %v1442_v22 = vsel %vm1297_vm4, %v1441_v1, %v1177_v27  ;;  %v1452_v32 = vsel %vm1297_vm4, %v1451_v4, %v1213_v36 }
 0x113   : > { %v1444_v45 = vsel %vm1300_vm5, %v1443_v21, %v1442_v22  ;;  %1278 = vrot.lane.b32.xlu0 %v2512_v42, %s2272_s22  ;;  %v1454_v6 = vsel %vm1300_vm5, %v1453_v9, %v1452_v32  ;;  %1282 = vrot.lane.b32.xlu1 %v2817_v47, %s2272_s22 }
 0x114   : > { %v1446_v50 = vsel %vm1303_vm6, %v1445_v18, %v1444_v45  ;;  %v1436_v18 = vsel %vm1303_vm6, %v1435_v39, %v1434_v44 }
 0x115   : > { %v1189_v35 = vpop.permute.xlu0 %1188  ;;  %v2865_v58 = vpop.permute.xlu1 %1226 }
 0x116   : > { %v1332_v59 = vsel %vm1297_vm4, %v1331_v46, %v1189_v35  ;;  %v1296_v35 = vrot.slane %v2580_v19, 7 }
 0x117   : > { %v1334_v20 = vsel %vm1300_vm5, %v1333_v52, %v1332_v59  ;;  %1244 = vrot.lane.b32.xlu0 %v2657_v51, %s2271_s21 }
 0x118   : > { %v1336_v62 = vsel %vm1303_vm6, %v1335_v29, %v1334_v20 }
 0x119   : > { %v2873_v53 = vpop.permute.xlu0 %1202  ;;  %v2875_v57 = vpop.permute.xlu1 %1262 }
 0x11b   : > { %1246 = vrot.lane.b32.xlu0 %v2817_v47, %s2271_s21 }
 0x11d   : > { %v1219_v63 = vpop.permute.xlu0 %1218  ;;  %v1149_v1 = vpop.permute.xlu1 %1148 }
 0x11e   : > { %v1455_v4 = vrot.slane %v1219_v63, 5  ;;  %v1437_v56 = vrot.slane %v1149_v1, 4  ;;  %v1311_v1 = vrot.slane %v2786_v31, 7 }
 0x120   : > { %v1456_v21 = vsel %vm1303_vm6, %v1455_v4, %v1454_v6  ;;  %v2886_v9 = vsel %vm1306_vm7, %v1437_v56, %v1436_v18  ;;  %v1305_v4 = vrot.slane %v2611_v54, 4  ;;  %v1312_v31 = vsel %vm1297_vm4, %v1311_v1, %v2757_v23 }
 0x121   : > { %v2888_v30 = vpop.permute.xlu0 %1250  ;;  %v2890_v27 = vpop.permute.xlu1 %1168  ;;  %v1425_v23 = vrot.slane %v2556_v8, 5 }
 0x125   : > { %v2892_v36 = vpop.permute.xlu0 %1286  ;;  %v1197_v22 = vpop.permute.xlu1 %1196 }
 0x126   : > { %v1337_v16 = vrot.slane %v1197_v22, 4  ;;  %v1421_v22 = vrot.slane %v2640_v15, 7 }
 0x128   : > { %v1338_v32 = vsel %vm1306_vm7, %v1337_v16, %v1336_v62  ;;  %v1298_v62 = vsel %vm1297_vm4, %v1296_v35, %v2510_v38  ;;  %v2273_v38 = vmov 1983009808   ;;  %v1422_v15 = vsel %vm1297_vm4, %v1421_v22, %v2540_v17 }
 0x129   : > { %v1161_v45 = vpop.permute.xlu0 %1160  ;;  %v1221_v46 = vpop.permute.xlu1 %1220  ;;  %v1301_v63 = vsel %vm1300_vm5, %v1299_v55, %v1298_v62  ;;  %v1502_v18 = vunpack.c.l.s4 %v2273_v38  ;;  %v1317_v55 = vrot.slane %v2797_v40, 4  ;;  %v1383_v22 = vrot.slane %v2890_v27, 6 }
 0x12a   : > { %v1327_v29 = vrot.slane %v1161_v45, 4  ;;  %v1457_v52 = vrot.slane %v1221_v46, 4  ;;  %v1423_v45 = vrot.slane %v2677_v26, 6  ;;  %v1314_v46 = vsel %vm1300_vm5, %v1313_v0, %v1312_v31 }
 0x12b   : > { %v1381_v0 = vrot.slane %v2833_v61, 7 }
 0x12c   : > { %v1328_v6 = vsel %vm1306_vm7, %v1327_v29, %v1326_v7  ;;  %v2898_v59 = vsel %vm1306_vm7, %v1457_v52, %v1456_v21  ;;  %v1302_v7 = vrot.slane %v2508_v37, 5  ;;  %v1308_v37 = vrot.slane %v2685_v48, 3 }
 0x12d   : > { %v1185_v12 = vpop.permute.xlu0 %1184  ;;  %v2900_v20 = vpop.permute.xlu1 %1252  ;;  %v1503_v52 = vunpack.c.0.s8 %v1502_v18  ;;  %v1315_v48 = vrot.slane %v2751_v14, 5  ;;  %v1424_v26 = vsel %vm1300_vm5, %v1423_v45, %v1422_v15  ;;  %v1429_v45 = vrot.slane %v2743_v10, 3 }
 0x12e   : > { %v1447_v13 = vrot.slane %v1185_v12, 4  ;;  %v1304_v21 = vsel %vm1303_vm6, %v1302_v7, %v1301_v63 }
 0x12f   : > { %v1307_v54 = vsel %vm1306_vm7, %v1305_v4, %v1304_v21  ;;  %v2940_v62 = vsub.s32 %v1503_v52, %v2382_v5  ;;  %v1427_v4 = vrot.slane %v2711_v3, 4  ;;  %v1341_v52 = vrot.slane %v2865_v58, 7 }
 0x130   : > { %v2906_v44 = vsel %vm1306_vm7, %v1447_v13, %v1446_v50  ;;  %v1310_v12 = vsel %vm1309_vm8, %v1308_v37, %v1307_v54  ;;  %v1316_v13 = vsel %vm1303_vm6, %v1315_v48, %v1314_v46 }
 0x131   : > { %v2908_v39 = vpop.permute.xlu0 %1204  ;;  %v2910_v19 = vpop.permute.xlu1 %1288  ;;  %v1318_v8 = vsel %vm1306_vm7, %v1317_v55, %v1316_v13 }
 0x135   : > { %v2917_v56 = vpop.permute.xlu0 %1228  ;;  %v1163_v50 = vpop.permute.xlu1 %1162 }
 0x136   : > { %v1329_v16 = vrot.slane %v1163_v50, 3  ;;  %v1343_v15 = vrot.slane %v2917_v56, 6  ;;  %v1391_v56 = vrot.slane %v2873_v53, 7 }
 0x138   : > { %v1330_v34 = vsel %vm1309_vm8, %v1329_v16, %v1328_v6  ;;  %v1319_v6 = vrot.slane %v2839_v28, 3  ;;  %v1426_v28 = vsel %vm1303_vm6, %v1425_v23, %v1424_v26 }
 0x139   : > { %v2928_v29 = vpop.permute.xlu0 %1264  ;;  %v1171_v35 = vpop.permute.xlu1 %1170  ;;  %v1499_v17 = vcombine.low %v1310_v12, %v1330_v34  ;;  %v1500_v38 = vcombine.high %v1310_v12, %v1330_v34  ;;  %v1428_v34 = vsel %vm1306_vm7, %v1427_v4, %v1426_v28 }
 0x13a   : > { %v1320_v18 = vsel %vm1309_vm8, %v1319_v6, %v1318_v8  ;;  %v1385_v50 = vrot.slane %v1171_v35, 5  ;;  %v1430_v6 = vsel %vm1309_vm8, %v1429_v45, %v1428_v34  ;;  %v1463_v34 = vrot.slane %v2900_v20, 6 }
 0x13b   : > { %v2952_v54 = vrot.slane %v1499_v17, %v2940_v62  ;;  %v1393_v17 = vrot.slane %v2908_v39, 6  ;;  %v1473_v45 = vrot.slane %v2910_v19, 6  ;;  %v1351_v19 = vrot.slane %v2875_v57, 7 }
 0x13c   : > { %v1371_v57 = vrot.slane %v2799_v41, 7 }
 0x13d   : > { %v1151_v7 = vpop.permute.xlu0 %1150  ;;  %v1199_v63 = vpop.permute.xlu1 %1198 }
 0x13e   : > { %v1439_v1 = vrot.slane %v1151_v7, 3  ;;  %v1339_v14 = vrot.slane %v1199_v63, 3 }
 0x140   : > { %v1440_v40 = vsel %vm1309_vm8, %v1439_v1, %v2886_v9  ;;  %v1340_v21 = vsel %vm1309_vm8, %v1339_v14, %v1338_v32  ;;  %v2958_v9 = vrot.slane %v1500_v38, %v2940_v62 }
 0x141   : > { %v1165_v16 = vpop.permute.xlu0 %1164  ;;  %v1515_v37 = vcombine.low %v1320_v18, %v1340_v21  ;;  %v1516_v3 = vcombine.high %v1320_v18, %v1340_v21  ;;  %v1207_v31 = vpop.permute.xlu1 %1206 }
 0x142   : > { %v1382_v61 = vsel %vm1297_vm4, %v1381_v0, %v1165_v16  ;;  %v1395_v63 = vrot.slane %v1207_v31, 5 }
 0x143   : > { %v1384_v32 = vsel %vm1300_vm5, %v1383_v22, %v1382_v61  ;;  %v2962_v27 = vrot.slane %v1515_v37, %v2940_v62  ;;  %v2965_v46 = vrot.slane %v1516_v3, %v2940_v62 }
 0x144   : > { %v2969_v35 = vsel %vm1303_vm6, %v1385_v50, %v1384_v32 }
 0x145   : > { %v1187_v48 = vpop.permute.xlu0 %1186  ;;  %v1225_v10 = vpop.permute.xlu1 %1224  ;;  %v1547_v12 = vcombine.low %v2952_v54, %v2962_v27  ;;  %v1548_v23 = vcombine.high %v2952_v54, %v2962_v27  ;;  %v1563_v13 = vcombine.low %v2958_v9, %v2965_v46 }
 0x146   : > { %v1449_v26 = vrot.slane %v1187_v48, 3  ;;  %v1342_v58 = vsel %vm1297_vm4, %v1341_v52, %v1225_v10 }
 0x147   : > { %v2981_v55 = vsel %vm1300_vm5, %v1343_v15, %v1342_v58 }
 0x148   : > { %v1450_v7 = vsel %vm1309_vm8, %v1449_v26, %v2906_v44  ;;  %v1353_v26 = vrot.slane %v2928_v29, 6  ;;  %v1361_v29 = vrot.slane %v2618_v60, 7 }
 0x149   : > { %v1703_v1 = vcombine.low %v1430_v6, %v1450_v7  ;;  %v1704_v14 = vcombine.high %v1430_v6, %v1450_v7  ;;  %v1201_v4 = vpop.permute.xlu0 %1200  ;;  %v2987_v8 = vpop.permute.xlu1 %1238 }
 0x14a   : > { %v1392_v0 = vsel %vm1297_vm4, %v1391_v56, %v1201_v4 }
 0x14b   : > { %v1394_v38 = vsel %vm1300_vm5, %v1393_v17, %v1392_v0  ;;  %v3001_v37 = vrot.slane %v1703_v1, %v2940_v62  ;;  %v3004_v3 = vrot.slane %v1704_v14, %v2940_v62 }
 0x14c   : > { %v1396_v28 = vsel %vm1303_vm6, %v1395_v63, %v1394_v38 }
 0x14d   : > { %v1223_v18 = vpop.permute.xlu0 %1222  ;;  %v2992_v50 = vpop.permute.xlu1 %1254 }
 0x14e   : > { %v1459_v53 = vrot.slane %v1223_v18, 3  ;;  %v1373_v18 = vrot.slane %v2809_v11, 6 }
 0x150   : > { %v1460_v44 = vsel %vm1309_vm8, %v1459_v53, %v2898_v59  ;;  %v1461_v59 = vrot.slane %v2888_v30, 7 }
 0x151   : > { %v1719_v21 = vcombine.low %v1440_v40, %v1460_v44  ;;  %v1720_v39 = vcombine.high %v1440_v40, %v1460_v44  ;;  %v2996_v22 = vpop.permute.xlu0 %1230  ;;  %v2998_v16 = vpop.permute.xlu1 %1266  ;;  %v1471_v40 = vrot.slane %v2892_v36, 7 }
 0x153   : > { %v3007_v31 = vrot.slane %v1719_v21, %v2940_v62  ;;  %v3010_v61 = vrot.slane %v1720_v39, %v2940_v62  ;;  %v1363_v21 = vrot.slane %v2622_v33, 6  ;;  %v1372_v39 = vsel %vm1297_vm4, %v1371_v57, %v2769_v25 }
 0x154   : > { %v1377_v33 = vrot.slane %v2819_v49, 4  ;;  %v1367_v25 = vrot.slane %v2657_v51, 4 }
 0x155   : > { %v1249_v32 = vpop.permute.xlu0 %1248  ;;  %v1285_v52 = vpop.permute.xlu1 %1284  ;;  %v1751_v15 = vcombine.low %v3001_v37, %v3007_v31  ;;  %v1752_v48 = vcombine.high %v3001_v37, %v3007_v31  ;;  %v1767_v10 = vcombine.low %v3004_v3, %v3010_v61 }
 0x156   : > { %v1462_v6 = vsel %vm1297_vm4, %v1461_v59, %v1249_v32  ;;  %v1472_v30 = vsel %vm1297_vm4, %v1471_v40, %v1285_v52  ;;  %v1362_v59 = vsel %vm1297_vm4, %v1361_v29, %v2514_v43  ;;  %v1365_v40 = vrot.slane %v2512_v42, 5 }
 0x157   : > { %v3025_v36 = vsel %vm1300_vm5, %v1463_v34, %v1462_v6  ;;  %v3028_v20 = vsel %vm1300_vm5, %v1473_v45, %v1472_v30  ;;  %v1374_v34 = vsel %vm1300_vm5, %v1373_v18, %v1372_v39  ;;  %v1364_v11 = vsel %vm1300_vm5, %v1363_v21, %v1362_v59 }
 0x158   : > { %v1375_v32 = vrot.slane %v2759_v24, 5  ;;  %v1366_v42 = vsel %vm1303_vm6, %v1365_v40, %v1364_v11  ;;  %v2274_v30 = vmov 1934713408   ;;  %v1369_v24 = vrot.slane %v2817_v47, 3 }
 0x159   : > { %v1261_v58 = vpop.permute.xlu0 %1260  ;;  %v1173_v56 = vpop.permute.xlu1 %1172  ;;  %v1368_v51 = vsel %vm1306_vm7, %v1367_v25, %v1366_v42 }
 0x15a   : > { %v1352_v7 = vsel %vm1297_vm4, %v1351_v19, %v1261_v58  ;;  %v1376_v6 = vsel %vm1303_vm6, %v1375_v32, %v1374_v34  ;;  %v1550_v19 = vunpack.c.l.s4 %v2274_v30  ;;  %v1387_v57 = vrot.slane %v1173_v56, 4 }
 0x15b   : > { %v3034_v63 = vsel %vm1300_vm5, %v1353_v26, %v1352_v7  ;;  %v1378_v49 = vsel %vm1306_vm7, %v1377_v33, %v1376_v6  ;;  %v1465_v34 = vrot.slane %v2992_v50, 5  ;;  %v1345_v6 = vrot.slane %v2996_v22, 5 }
 0x15c   : > { %v1551_v18 = vunpack.c.0.s8 %v1550_v19  ;;  %v1388_v47 = vsel %vm1306_vm7, %v1387_v57, %v2969_v35  ;;  %v1355_v57 = vrot.slane %v2998_v16, 5 }
 0x15d   : > { %v3036_v17 = vpop.permute.xlu0 %1274  ;;  %v3038_v1 = vpop.permute.xlu1 %1232 }
 0x161   : > { %v3040_v14 = vpop.permute.xlu0 %1290  ;;  %v3042_v4 = vpop.permute.xlu1 %1256 }
 0x162   : > { %v1475_v35 = vrot.slane %v3040_v14, 5 }
 0x164   : > { %v1476_v54 = vsel %vm1303_vm6, %v1475_v35, %v3028_v20 }
 0x165   : > { %v1209_v0 = vpop.permute.xlu0 %1208  ;;  %v3044_v38 = vpop.permute.xlu1 %1276 }
 0x166   : > { %v1397_v41 = vrot.slane %v1209_v0, 4 }
 0x168   : > { %v1398_v26 = vsel %vm1306_vm7, %v1397_v41, %v1396_v28  ;;  %v1370_v28 = vsel %vm1309_vm8, %v1369_v24, %v1368_v51  ;;  %v1467_v41 = vrot.slane %v3042_v4, 4  ;;  %v1401_v51 = vrot.slane %v2987_v8, 7 }
 0x169   : > { %v3049_v53 = vpop.permute.xlu0 %1240  ;;  %v1139_v44 = vpop.permute.xlu1 %1138 }
 0x16a   : > { %v1379_v43 = vrot.slane %v1139_v44, 3 }
 0x16c   : > { %v1380_v29 = vsel %vm1309_vm8, %v1379_v43, %v1378_v49  ;;  %v1466_v43 = vsel %vm1303_vm6, %v1465_v34, %v3025_v36  ;;  %v1356_v34 = vsel %vm1303_vm6, %v1355_v57, %v3034_v63 }
 0x16d   : > { %v3058_v45 = vpop.permute.xlu0 %1268  ;;  %v1211_v60 = vpop.permute.xlu1 %1210 }
 0x16e   : > { %v1399_v52 = vrot.slane %v1211_v60, 3  ;;  %v3081_v60 = vsub.s32 %v1551_v18, %v2382_v5  ;;  %v1357_v18 = vrot.slane %v3058_v45, 4 }
 0x170   : > { %v1400_v0 = vsel %vm1309_vm8, %v1399_v52, %v1398_v26  ;;  %v1347_v26 = vrot.slane %v3038_v1, 4  ;;  %v3105_v22 = vrot.slane %v1547_v12, %v3081_v60  ;;  %v3111_v36 = vrot.slane %v1548_v23, %v3081_v60 }
 0x171   : > { %v1293_v58 = vpop.permute.xlu0 %1292  ;;  %v3067_v7 = vpop.permute.xlu1 %1236  ;;  %v1617_v44 = vcombine.low %v1380_v29, %v1400_v0  ;;  %v1618_v21 = vcombine.high %v1380_v29, %v1400_v0  ;;  %v1468_v0 = vsel %vm1306_vm7, %v1467_v41, %v1466_v43  ;;  %v1346_v29 = vsel %vm1303_vm6, %v1345_v6, %v2981_v55 }
 0x172   : > { %v1477_v42 = vrot.slane %v1293_v58, 4  ;;  %v3136_v16 = vrot.slane %v1751_v15, %v3081_v60  ;;  %v3142_v8 = vrot.slane %v1752_v48, %v3081_v60  ;;  %v1411_v15 = vrot.slane %v3036_v17, 7 }
 0x173   : > { %v3084_v11 = vrot.slane %v1617_v44, %v2940_v62  ;;  %v3087_v32 = vrot.slane %v1618_v21, %v2940_v62  ;;  %v1348_v21 = vsel %vm1306_vm7, %v1347_v26, %v1346_v29  ;;  %v3154_v37 = vrot.slane %v1767_v10, %v3081_v60 }
 0x174   : > { %v1478_v44 = vsel %vm1306_vm7, %v1477_v42, %v1476_v54  ;;  %v1358_v31 = vsel %vm1306_vm7, %v1357_v18, %v1356_v34 }
 0x175   : > { %v1175_v39 = vpop.permute.xlu0 %1174  ;;  %v1259_v59 = vpop.permute.xlu1 %1258 }
 0x176   : > { %v1389_v40 = vrot.slane %v1175_v39, 3  ;;  %v1469_v4 = vrot.slane %v1259_v59, 3 }
 0x178   : > { %v1390_v56 = vsel %vm1309_vm8, %v1389_v40, %v1388_v47  ;;  %v1470_v27 = vsel %vm1309_vm8, %v1469_v4, %v1468_v0 }
 0x179   : > { %v1601_v52 = vcombine.low %v1370_v28, %v1390_v56  ;;  %v1602_v33 = vcombine.high %v1370_v28, %v1390_v56  ;;  %v1235_v25 = vpop.permute.xlu0 %1234  ;;  %v1273_v50 = vpop.permute.xlu1 %1272  ;;  %v1741_v20 = vrot.slane %v1470_v27, %v2940_v62 }
 0x17a   : > { %v1349_v14 = vrot.slane %v1235_v25, 3  ;;  %v1412_v17 = vsel %vm1297_vm4, %v1411_v15, %v1273_v50 }
 0x17b   : > { %v3094_v30 = vrot.slane %v1601_v52, %v2940_v62  ;;  %v3097_v19 = vrot.slane %v1602_v33, %v2940_v62  ;;  %v1413_v52 = vrot.slane %v3044_v38, 6 }
 0x17c   : > { %v1350_v55 = vsel %vm1309_vm8, %v1349_v14, %v1348_v21  ;;  %v3188_v21 = vrot.slane %v1563_v13, %v3081_v60 }
 0x17d   : > { %v3113_v58 = vpop.permute.xlu0 %1242  ;;  %v1295_v24 = vpop.permute.xlu1 %1294  ;;  %v1649_v1 = vcombine.low %v3094_v30, %v3084_v11  ;;  %v1650_v49 = vcombine.high %v3094_v30, %v3084_v11  ;;  %v1665_v12 = vcombine.low %v3097_v19, %v3087_v32  ;;  %v1537_v63 = vrot.slane %v1350_v55, %v2940_v62 }
 0x17e   : > { %v1479_v23 = vrot.slane %v1295_v24, 3  ;;  %v1414_v24 = vsel %vm1300_vm5, %v1413_v52, %v1412_v17 }
 0x180   : > { %v1480_v39 = vsel %vm1309_vm8, %v1479_v23, %v1478_v44 }
 0x181   : > { %v1271_v45 = vpop.permute.xlu0 %1270  ;;  %v1749_v59 = vrot.slane %v1480_v39, %v2940_v62  ;;  %v2133_v28 = vcombine.high %v1470_v27, %v1480_v39  ;;  %v1281_v40 = vpop.permute.xlu1 %1280  ;;  %v1403_v39 = vrot.slane %v3049_v53, 6 }
 0x182   : > { %v1359_v47 = vrot.slane %v1271_v45, 3  ;;  %v1417_v43 = vrot.slane %v1281_v40, 4 }
 0x183   : > { %v1775_v48 = vcombine.low %v1741_v20, %v1749_v59  ;;  %v1776_v41 = vcombine.high %v1741_v20, %v1749_v59  ;;  %v3158_v56 = vrot.slane %v2133_v28, %v3081_v60 }
 0x184   : > { %v1360_v33 = vsel %vm1309_vm8, %v1359_v47, %v1358_v31 }
 0x185   : > { %v1545_v3 = vrot.slane %v1360_v33, %v2940_v62  ;;  %v2131_v61 = vcombine.high %v1350_v55, %v1360_v33  ;;  %v1279_v10 = vpop.permute.xlu0 %1278  ;;  %v1283_v25 = vpop.permute.xlu1 %1282  ;;  %v1783_v6 = vrot.slane %v1775_v48, %v3081_v60  ;;  %v3167_v35 = vrot.slane %v1776_v41, %v3081_v60 }
 0x186   : > { %v1415_v4 = vrot.slane %v1279_v10, 5  ;;  %v1803_v38 = vcombine.low %v3154_v37, %v3158_v56  ;;  %v1804_v50 = vcombine.high %v3154_v37, %v3158_v56  ;;  %v1419_v57 = vrot.slane %v1283_v25, 3 }
 0x187   : > { %v1571_v42 = vcombine.low %v1537_v63, %v1545_v3  ;;  %v1572_v26 = vcombine.high %v1537_v63, %v1545_v3  ;;  %v1799_v0 = vcombine.low %v3136_v16, %v1783_v6  ;;  %v1800_v14 = vcombine.high %v3136_v16, %v1783_v6 }
 0x188   : > { %v1801_v54 = vcombine.low %v3142_v8, %v3167_v35  ;;  %v3179_v27 = vrot.slane %v2131_v61, %v3081_v60  ;;  %v1416_v23 = vsel %vm1303_vm6, %v1415_v4, %v1414_v24  ;;  %v1402_v16 = vsel %vm1297_vm4, %v1401_v51, %v3067_v7 }
 0x189   : > { %v1245_v29 = vpop.permute.xlu0 %1244  ;;  %v1579_v18 = vrot.slane %v1571_v42, %v3081_v60  ;;  %v1586_v44 = vrot.slane %v1572_v26, %v3081_v60  ;;  %v1405_v55 = vrot.slane %v3113_v58, 5  ;;  %v1418_v20 = vsel %vm1306_vm7, %v1417_v43, %v1416_v23 }
 0x18a   : > { %v1407_v45 = vrot.slane %v1245_v29, 4  ;;  %v1420_v9 = vsel %vm1309_vm8, %v1419_v57, %v1418_v20  ;;  %v1599_v13 = vcombine.low %v3188_v21, %v3179_v27  ;;  %v1802_v53 = vcombine.high %v3142_v8, %v3167_v35 }
 0x18b   : > { %v1596_v59 = vcombine.high %v3105_v22, %v1579_v18  ;;  %v1595_v28 = vcombine.low %v3105_v22, %v1579_v18  ;;  %v1597_v40 = vcombine.low %v3111_v36, %v1586_v44  ;;  %v1598_v46 = vcombine.high %v3111_v36, %v1586_v44 }
 0x18c   : > { %v1404_v7 = vsel %vm1300_vm5, %v1403_v39, %v1402_v16  ;;  %v1600_v22 = vcombine.high %v3188_v21, %v3179_v27  ;;  %v1647_v31 = vrot.slane %v1420_v9, %v2940_v62  ;;  %v1842_v8 = vsel %vm1805_vm9, %v1799_v0, -inf }
 0x18d   : > { %v1247_v58 = vpop.permute.xlu0 %1246  ;;  %v1809_v51 = vsel %vm1805_vm9, %v1596_v59, -inf  ;;  %v1806_v34 = vsel %vm1805_vm9, %v1595_v28, -inf  ;;  %v1406_v15 = vsel %vm1303_vm6, %v1405_v55, %v1404_v7  ;;  %v1812_v52 = vsel %vm1805_vm9, %v1597_v40, -inf }
 0x18e   : > { %v1409_v47 = vrot.slane %v1247_v58, 3  ;;  %1810 = vmax.xlane.f32.xlu1 %v1809_v51  ;;  %1807 = vmax.xlane.f32.xlu0 %v1806_v34  ;;  %v1408_v36 = vsel %vm1306_vm7, %v1407_v45, %v1406_v15  ;;  %v1815_v17 = vsel %vm1805_vm9, %v1598_v46, -inf  ;;  %v1845_v33 = vsel %vm1805_vm9, %v1800_v14, -inf }
 0x18f   : > { %v1657_v3 = vrot.slane %v1649_v1, %v3081_v60  ;;  %v1848_v6 = vsel %vm1805_vm9, %v1801_v54, -inf  ;;  %v1818_v42 = vsel %vm1805_vm9, %v1599_v13, -inf  ;;  %v1664_v0 = vrot.slane %v1650_v49, %v3081_v60 }
 0x190   : > { %v1410_v48 = vsel %vm1309_vm8, %v1409_v47, %v1408_v36  ;;  %v1854_v14 = vsel %vm1805_vm9, %v1803_v38, -inf  ;;  %v1851_v24 = vsel %vm1805_vm9, %v1802_v53, -inf  ;;  %v1672_v23 = vrot.slane %v1665_v12, %v3081_v60 }
 0x191   : > { %v1639_v41 = vrot.slane %v1410_v48, %v2940_v62  ;;  %v2132_v43 = vcombine.high %v1410_v48, %v1420_v9  ;;  %v1821_v29 = vsel %vm1805_vm9, %v1600_v22, -inf  ;;  %v1857_v18 = vsel %vm1805_vm9, %v1804_v50, -inf }
 0x192   : > { %1813 = vmax.xlane.f32.xlu1 %v1812_v52  ;;  %1843 = vmax.xlane.f32.xlu0 %v1842_v8  ;;  %v1879_v40 = vand.u32 127, %v183_v2 }
 0x193   : > { %v1673_v63 = vcombine.low %v1639_v41, %v1647_v31  ;;  %v1674_v4 = vcombine.high %v1639_v41, %v1647_v31  ;;  %v1696_v27 = vrot.slane %v2132_v43, %v3081_v60 }
 0x194   : > { %v1882_v50 = vsub.s32 %v1879_v40, %v2382_v5 }
 0x195   : > { %v1681_v61 = vrot.slane %v1673_v63, %v3081_v60  ;;  %v1688_v1 = vrot.slane %v1674_v4, %v3081_v60  ;;  %v1701_v49 = vcombine.low %v1672_v23, %v1696_v27  ;;  %v1702_v32 = vcombine.high %v1672_v23, %v1696_v27 }
 0x196   : > { %1816 = vmax.xlane.f32.xlu1 %v1815_v17  ;;  %1846 = vmax.xlane.f32.xlu0 %v1845_v33 }
 0x197   : > { %v1698_v10 = vcombine.high %v1657_v3, %v1681_v61  ;;  %v1697_v35 = vcombine.low %v1657_v3, %v1681_v61  ;;  %v1700_v57 = vcombine.high %v1664_v0, %v1688_v1  ;;  %v1699_v54 = vcombine.low %v1664_v0, %v1688_v1 }
 0x198   : > { %v1836_v38 = vsel %vm1805_vm9, %v1701_v49, -inf  ;;  %v1839_v19 = vsel %vm1805_vm9, %v1702_v32, -inf }
 0x199   : > { %v1827_v25 = vsel %vm1805_vm9, %v1698_v10, -inf  ;;  %v1824_v26 = vsel %vm1805_vm9, %v1697_v35, -inf  ;;  %v1833_v11 = vsel %vm1805_vm9, %v1700_v57, -inf  ;;  %v1830_v30 = vsel %vm1805_vm9, %v1699_v54, -inf }
 0x19a   : > { %1828 = vmax.xlane.f32.xlu1 %v1827_v25  ;;  %1849 = vmax.xlane.f32.xlu0 %v1848_v6 }
 0x19e   : > { %1819 = vmax.xlane.f32.xlu1 %v1818_v42  ;;  %1825 = vmax.xlane.f32.xlu0 %v1824_v26 }
 0x1a2   : > { %1855 = vmax.xlane.f32.xlu1 %v1854_v14  ;;  %1852 = vmax.xlane.f32.xlu0 %v1851_v24 }
 0x1a6   : > { %1834 = vmax.xlane.f32.xlu1 %v1833_v11  ;;  %1831 = vmax.xlane.f32.xlu0 %v1830_v30 }
 0x1aa   : > { %1837 = vmax.xlane.f32.xlu1 %v1836_v38  ;;  %1822 = vmax.xlane.f32.xlu0 %v1821_v29  ;;  %v2275_v29 = vmov 0.0  }
 0x1ae   : > { %1858 = vmax.xlane.f32.xlu0 %v1857_v18 }
 0x1b2   : > { %1840 = vmax.xlane.f32.xlu0 %v1839_v19 }
 0x21b   : > { %v1811_v12 = vpop.xlane.xlu1 %1810  ;;  %v1808_v44 = vpop.xlane.xlu0 %1807 }
 0x21c   : > { %v1887_v7 = vrot.slane %v1811_v12, %v1882_v50  ;;  %v1883_v58 = vrot.slane %v1808_v44, %v1882_v50 }
 0x21e   : > { %v1952_v5 = vsel %vm1297_vm4, %v1887_v7, %v1883_v58 }
 0x21f   : > { %v1814_v21 = vpop.xlane.xlu1 %1813  ;;  %v1844_v39 = vpop.xlane.xlu0 %1843 }
 0x220   : > { %v1931_v51 = vrot.slane %v1844_v39, %v1882_v50  ;;  %v1891_v22 = vrot.slane %v1814_v21, %v1882_v50 }
 0x222   : > { %v1953_v3 = vsel %vm1300_vm5, %v1891_v22, %v1952_v5 }
 0x223   : > { %v1817_v16 = vpop.xlane.xlu1 %1816  ;;  %v1847_v55 = vpop.xlane.xlu0 %1846 }
 0x224   : > { %v1935_v46 = vrot.slane %v1847_v55, %v1882_v50  ;;  %v1895_v47 = vrot.slane %v1817_v16, %v1882_v50 }
 0x226   : > { %v1962_v36 = vsel %vm1297_vm4, %v1935_v46, %v1931_v51  ;;  %v1954_v10 = vsel %vm1303_vm6, %v1895_v47, %v1953_v3 }
 0x227   : > { %v1829_v20 = vpop.xlane.xlu1 %1828  ;;  %v1850_v45 = vpop.xlane.xlu0 %1849 }
 0x228   : > { %v1939_v53 = vrot.slane %v1850_v45, %v1882_v50  ;;  %v1911_v52 = vrot.slane %v1829_v20, %v1882_v50 }
 0x22a   : > { %v1963_v2 = vsel %vm1300_vm5, %v1939_v53, %v1962_v36 }
 0x22b   : > { %v1820_v59 = vpop.xlane.xlu1 %1819  ;;  %v1826_v28 = vpop.xlane.xlu0 %1825 }
 0x22c   : > { %v1907_v31 = vrot.slane %v1826_v28, %v1882_v50  ;;  %v1899_v8 = vrot.slane %v1820_v59, %v1882_v50 }
 0x22e   : > { %v1957_v25 = vsel %vm1297_vm4, %v1911_v52, %v1907_v31  ;;  %v1955_v4 = vsel %vm1306_vm7, %v1899_v8, %v1954_v10 }
 0x22f   : > { %v1856_v37 = vpop.xlane.xlu1 %1855  ;;  %v1853_v56 = vpop.xlane.xlu0 %1852 }
 0x230   : > { %v1943_v34 = vrot.slane %v1853_v56, %v1882_v50  ;;  %v1947_v48 = vrot.slane %v1856_v37, %v1882_v50 }
 0x232   : > { %v1964_v63 = vsel %vm1303_vm6, %v1943_v34, %v1963_v2 }
 0x233   : > { %v1832_v9 = vpop.xlane.xlu0 %1831  ;;  %v1835_v13 = vpop.xlane.xlu1 %1834  ;;  %v1965_v26 = vsel %vm1306_vm7, %v1947_v48, %v1964_v63 }
 0x234   : > { %v1915_v41 = vrot.slane %v1832_v9, %v1882_v50  ;;  %v1919_v6 = vrot.slane %v1835_v13, %v1882_v50 }
 0x236   : > { %v1958_v43 = vsel %vm1300_vm5, %v1915_v41, %v1957_v25 }
 0x237   : > { %v1823_v15 = vpop.xlane.xlu0 %1822  ;;  %v1838_v17 = vpop.xlane.xlu1 %1837  ;;  %v1959_v54 = vsel %vm1303_vm6, %v1919_v6, %v1958_v43 }
 0x238   : > { %v1903_v33 = vrot.slane %v1823_v15, %v1882_v50  ;;  %v1923_v42 = vrot.slane %v1838_v17, %v1882_v50 }
 0x23a   : > { %v1956_v1 = vsel %vm1309_vm8, %v1903_v33, %v1955_v4  ;;  %v1960_v23 = vsel %vm1306_vm7, %v1923_v42, %v1959_v54 }
 0x23b   : > { %v1859_v61 = vpop.xlane.xlu0 %1858 }
 0x23c   : > { %v1951_v35 = vrot.slane %v1859_v61, %v1882_v50 }
 0x23e   : > { %v1966_v0 = vsel %vm1309_vm8, %v1951_v35, %v1965_v26 }
 0x23f   : > { %v1970_v14 = vcombine.low %v1956_v1, %v1966_v0  ;;  %v1971_v24 = vcombine.high %v1956_v1, %v1966_v0  ;;  %v1841_v57 = vpop.xlane.xlu0 %1840 }
 0x240   : > { %v1927_v27 = vrot.slane %v1841_v57, %v1882_v50 }
 0x241   : > { %v1978_v30 = vrot.slane %v1970_v14, %v2940_v62  ;;  %v1985_v49 = vrot.slane %v1971_v24, %v2940_v62 }
 0x242   : > { %v1961_v11 = vsel %vm1309_vm8, %v1927_v27, %v1960_v23 }
 0x243   : > { %v1992_v38 = vrot.slane %v1961_v11, %v2940_v62  ;;  %v1993_v18 = vcombine.high %v1961_v11, %v2275_v29 }
 0x245   : > { %v1994_v32 = vcombine.low %v1978_v30, %v1992_v38  ;;  %v1995_v19 = vcombine.high %v1978_v30, %v1992_v38  ;;  %v2010_v12 = vcombine.low %v1985_v49, %v1993_v18 }
 0x247   : > { %v2009_v44 = vrot.slane %v1995_v19, %v3081_v60  ;;  %v2002_v21 = vrot.slane %v1994_v32, %v3081_v60  ;;  %v2017_v39 = vrot.slane %v2010_v12, %v3081_v60 }
 0x249   : > { %2026 = vrot.lane.b32.xlu0 %v2009_v44, %s2276_s23  ;;  %v2018_v16 = vcombine.high %v2002_v21, %v2275_v29  ;;  %v2020_v55 = vcombine.high %v2017_v39, %v2275_v29  ;;  %v2019_v62 = vcombine.high %v2009_v44, %v2275_v29 }
 0x24b   : > { %2022 = vrot.lane.b32.xlu1 %v2018_v16, %s2277_s24 }
 0x24d   : > { %2038 = vrot.lane.b32.xlu0 %v2020_v55, %s2278_s25 }
 0x24f   : > { %2030 = vrot.lane.b32.xlu1 %v2019_v62, %s2279_s26 }
 0x253   : > { %2034 = vrot.lane.b32.xlu1 %v2017_v39, %s2280_s27 }
 0x2bb   : > { %v2027_v45 = vpop.permute.xlu0 %2026 }
 0x2bd   : > { %v2023_v20 = vpop.permute.xlu1 %2022 }
 0x2be   : > { %v2042_v60 = vsel %vm2041_vm10, %v2002_v21, %v2023_v20 }
 0x2bf   : > { %v2044_v28 = vsel %vm2043_vm11, %v2042_v60, %v2027_v45  ;;  %v2039_v56 = vpop.permute.xlu0 %2038 }
 0x2c1   : > { %v2031_v59 = vpop.permute.xlu1 %2030 }
 0x2c2   : > { %v2046_v40 = vsel %vm2045_vm12, %v2044_v28, %v2031_v59 }
 0x2c5   : > { %v2035_v37 = vpop.permute.xlu1 %2034 }
 0x2c6   : > { %v2048_v50 = vsel %vm2047_vm13, %v2046_v40, %v2035_v37 }
 0x2c7   : > { %v2050_v9 = vsel %vm2049_vm14, %v2048_v50, %v2039_v56 }
 0x2c8   : > { %2052 = vst.msk [vmem:[%s136_s2] sm:$0x7] %vm2051_vm15, %v2050_v9 }
 0x2c9 PF: > { %p11_p8 = scmp.ge.s32.totalorder %s2313_s11, 4   ;;  %s3297_s6 = smov %s2253_s7 }
 0x2ca   : > { %s3298_s7 = smov %s2257_s8  ;;  %s3299_s8 = smov %s2323_s14 }
 0x2cb   : > { %s3300_s9 = smov %s2313_s11  ;;  %13 = sbr.rel (!%p11_p8) target bundleno = 3 (0x3), region = 64 }
 0x2d2   :  { %2072 = vsyncpa [#allocation4], 1 }
 0x2d3   :  { %2074 = vsyncpa [#allocation4 + $0x1], 1 }

</bundles_post_ra>
